<compile_context>
chip_gen: v7x
topology: tpu7x:2x2x1
jax: 0.10.0
libtpu: 0.0.40
codegen_flags: <defaults>
</compile_context>

<pallas_src>
import functools

import jax
import jax.numpy as jnp
from jax.experimental import pallas as pl
from jax.experimental.pallas import tpu as pltpu


# ----------------------------------------------------------------------------
# Pallas kernels
# ----------------------------------------------------------------------------

def _patch_embed_norm_kernel(x_ref, g_ref, b_ref, o_ref, *, eps):
    """(C, T) block -> LayerNorm stats/normalize in (C, T) -> one transpose ->
    gamma/beta FMA + store in (T, C)."""
    x = x_ref[...].astype(jnp.float32)                       # (C, T) lane-dense
    mean = jnp.mean(x, axis=0, keepdims=True)                # (1, T) sublane reduce
    centered = x - mean
    var = jnp.mean(centered * centered, axis=0, keepdims=True)
    yn = centered * jax.lax.rsqrt(var + eps)                 # (C, T) float32
    yt = yn.astype(o_ref.dtype).T                            # single narrow transpose
    g = g_ref[...].astype(o_ref.dtype)                       # (1, C) sublane-broadcast
    b = b_ref[...].astype(o_ref.dtype)
    o_ref[...] = (yt * g + b).astype(o_ref.dtype)            # one FMA + store


def _patch_embed_kernel(x_ref, o_ref):
    """No-norm variant: pure fused layout change, (C, T) -> (T, C)."""
    o_ref[...] = x_ref[...].T.astype(o_ref.dtype)


# ----------------------------------------------------------------------------
# Tiling helpers
# ----------------------------------------------------------------------------

def _pick_row_tile(L, C, itemsize, B, *, budget_bytes=2 << 20):
    """Pick the row tile T.

    Constraints / goals:
      - T must be a multiple of 128 dividing L (lane-dense, (8,128)-legal), or
        T == L (block dim equal to the full array dim is always legal).
      - the (C, T) block stays under `budget_bytes` so double-buffered in+out
        blocks fit every chip's scoped VMEM (incl. v7x's 64 MiB physical) while
        still amortizing the ~0.35 us per-grid-step overhead.
      - the resulting grid has >= 2 programs when possible, so multi-TensorCore
        chips (v7x) shard the ("parallel","parallel") grid across both cores.
    """
    max_elems = max(budget_bytes // (C * itemsize), 128)

    def largest_tile(limit):
        best = None
        upper = min(L, limit)
        for d in range(128, upper + 1, 128):
            if L % d == 0:
                best = d
        return best

    T = largest_tile(max_elems)
    if T is None:
        # No multiple-of-128 divisor under the budget: take the whole row.
        # (vmem_limit_bytes is raised by the caller if this block is large.)
        T = L
    if B * (L // T) < 2:
        # Single-program grid would idle one TensorCore on v7x; split if we can.
        half = largest_tile(L // 2)
        if half is not None:
            T = half
    return T


# ----------------------------------------------------------------------------
# Wrapper
# ----------------------------------------------------------------------------

def patch_embed(x_nchw, gamma=None, beta=None, *, eps=1e-5):
    """PatchEmbed.forward: (B, C, H, W) -> (B, H*W, C), optional LayerNorm(C)."""
    B, C, H, W = x_nchw.shape
    L = H * W
    itemsize = jnp.dtype(x_nchw.dtype).itemsize
    x2 = x_nchw.reshape(B, C, L)          # "flatten(2)" — pure metadata reshape

    T = _pick_row_tile(L, C, itemsize, B)
    grid = (B, L // T)

    out_shape = jax.ShapeDtypeStruct((B, L, C), x_nchw.dtype)
    x_spec = pl.BlockSpec((pl.Squeezed(), C, T), lambda b, t: (b, 0, t))
    o_spec = pl.BlockSpec((pl.Squeezed(), T, C), lambda b, t: (b, t, 0))

    # Raise the scoped-VMEM limit only if the (rare) T == L fallback produced a
    # block whose double-buffered in+out footprint nears the default limits.
    blk_bytes = C * T * itemsize
    vmem_needed = 4 * blk_bytes + 4 * C * 4          # 2x in + 2x out + gamma/beta
    vmem_limit = int(min(2 * vmem_needed, 100 << 20)) if vmem_needed > (12 << 20) else None
    cparams = pltpu.CompilerParams(
        dimension_semantics=("parallel", "parallel"),
        vmem_limit_bytes=vmem_limit,
    )

    total_bytes = 2 * B * L * C * itemsize

    if gamma is None:
        # norm_layer=None path: no gamma/beta streams at all.
        return pl.pallas_call(
            _patch_embed_kernel,
            out_shape=out_shape,
            grid=grid,
            in_specs=[x_spec],
            out_specs=o_spec,
            compiler_params=cparams,
            cost_estimate=pl.CostEstimate(
                flops=0, transcendentals=0, bytes_accessed=total_bytes),
        )(x2)

    g2 = gamma.reshape(1, C)
    b2 = beta.reshape(1, C)
    vec_spec = pl.BlockSpec((1, C), lambda b, t: (0, 0))
    return pl.pallas_call(
        functools.partial(_patch_embed_norm_kernel, eps=eps),
        out_shape=out_shape,
        grid=grid,
        in_specs=[x_spec, vec_spec, vec_spec],
        out_specs=o_spec,
        compiler_params=cparams,
        cost_estimate=pl.CostEstimate(
            flops=8 * B * L * C, transcendentals=B * L,
            bytes_accessed=total_bytes + 2 * C * 4),
    )(x2, g2, b2)


# ----------------------------------------------------------------------------
# Pure-JAX reference (mirrors the PyTorch forward) for correctness checking
# ----------------------------------------------------------------------------

def patch_embed_ref(x_nchw, gamma=None, beta=None, eps=1e-5):
    B, C, H, W = x_nchw.shape
    y = jnp.transpose(x_nchw.reshape(B, C, H * W), (0, 2, 1)).astype(jnp.float32)
    if gamma is not None:
        mean = jnp.mean(y, axis=-1, keepdims=True)
        var = jnp.mean((y - mean) ** 2, axis=-1, keepdims=True)
        y = (y - mean) * jax.lax.rsqrt(var + eps) * gamma + beta
    return y.astype(x_nchw.dtype)


# ----------------------------------------------------------------------------
# Main
# ----------------------------------------------------------------------------

if __name__ == "__main__":
    # Small shapes consistent with the module: patches_resolution = 32x32,
    # embed_dim = 96 (the PatchEmbed default), batch = 2.
    B, C, H, W = 2, 96, 32, 32
    key = jax.random.PRNGKey(0)
    kx, kg, kb = jax.random.split(key, 3)
    x = jax.random.normal(kx, (B, C, H, W), jnp.float32)
    gamma = 1.0 + 0.02 * jax.random.normal(kg, (C,), jnp.float32)
    beta = 0.02 * jax.random.normal(kb, (C,), jnp.float32)

    fwd_norm = jax.jit(patch_embed)                 # norm_layer = LayerNorm
    fwd_plain = jax.jit(lambda a: patch_embed(a))   # norm_layer = None (default)

    out_norm = jax.block_until_ready(fwd_norm(x, gamma, beta))
    out_plain = jax.block_until_ready(fwd_plain(x))

    assert out_norm.shape == (B, H * W, C), out_norm.shape
    assert out_plain.shape == (B, H * W, C), out_plain.shape

    ref_norm = patch_embed_ref(x, gamma, beta)
    ref_plain = patch_embed_ref(x)
    assert bool(jnp.allclose(out_plain, ref_plain)), "no-norm mismatch"
    assert bool(jnp.allclose(out_norm, ref_norm, rtol=1e-5, atol=1e-5)), "norm mismatch"
    assert bool(jnp.all(jnp.isfinite(out_norm)))

    print("KERNEL_OK")
</pallas_src>

<mosaic_0001>
module attributes {stable_mosaic.version = 11 : i64} {
  func.func @_patch_embed_norm_kernel(%arg0: i32, %arg1: i32, %arg2: memref<1x96x1024xf32, #tpu.memory_space<vmem>>, %arg3: memref<1x96xf32, #tpu.memory_space<vmem>>, %arg4: memref<1x96xf32, #tpu.memory_space<vmem>>, %arg5: memref<1x1024x96xf32, #tpu.memory_space<vmem>>) attributes {dimension_semantics = [#tpu.dimension_semantics<parallel>, #tpu.dimension_semantics<parallel>], iteration_bounds = array<i64: 2, 1>, scalar_prefetch = 0 : i64, scratch_operands = 0 : i64, tpu.core_type = #tpu.core_type<tc>, window_params = [{transform_indices = @transform_0, window_bounds = array<i64: 1, 96, 1024>}, {pipeline_mode = #tpu.pipeline_mode<synchronous>, transform_indices = @transform_1, window_bounds = array<i64: 1, 96>}, {pipeline_mode = #tpu.pipeline_mode<synchronous>, transform_indices = @transform_2, window_bounds = array<i64: 1, 96>}, {transform_indices = @transform_3, window_bounds = array<i64: 1, 1024, 96>}]} {
    %c0 = arith.constant 0 : index
    %c0_0 = arith.constant 0 : index
    %c0_1 = arith.constant 0 : index
    %0 = vector.load %arg2[%c0, %c0_0, %c0_1] : memref<1x96x1024xf32, #tpu.memory_space<vmem>>, vector<1x96x1024xf32>
    %1 = vector.shape_cast %0 : vector<1x96x1024xf32> to vector<96x1024xf32>
    %cst = arith.constant dense<0.000000e+00> : vector<1024xf32>
    %2 = vector.multi_reduction <add>, %1, %cst [0] : vector<96x1024xf32> to vector<1024xf32>
    %3 = vector.shape_cast %2 : vector<1024xf32> to vector<1x1024xf32>
    %cst_2 = arith.constant 9.600000e+01 : f32
    %4 = vector.broadcast %cst_2 : f32 to vector<1x1024xf32>
    %5 = arith.divf %3, %4 : vector<1x1024xf32>
    %6 = vector.broadcast %5 : vector<1x1024xf32> to vector<96x1024xf32>
    %7 = arith.subf %1, %6 : vector<96x1024xf32>
    %8 = arith.mulf %7, %7 : vector<96x1024xf32>
    %cst_3 = arith.constant dense<0.000000e+00> : vector<1024xf32>
    %9 = vector.multi_reduction <add>, %8, %cst_3 [0] : vector<96x1024xf32> to vector<1024xf32>
    %10 = vector.shape_cast %9 : vector<1024xf32> to vector<1x1024xf32>
    %cst_4 = arith.constant 9.600000e+01 : f32
    %11 = vector.broadcast %cst_4 : f32 to vector<1x1024xf32>
    %12 = arith.divf %10, %11 : vector<1x1024xf32>
    %cst_5 = arith.constant 9.99999974E-6 : f32
    %13 = vector.broadcast %cst_5 : f32 to vector<1x1024xf32>
    %14 = arith.addf %12, %13 : vector<1x1024xf32>
    %15 = math.rsqrt %14 : vector<1x1024xf32>
    %16 = vector.broadcast %15 : vector<1x1024xf32> to vector<96x1024xf32>
    %17 = arith.mulf %7, %16 : vector<96x1024xf32>
    %18 = tpu.transpose %17, [1, 0] : vector<96x1024xf32> -> vector<1024x96xf32>
    %c0_6 = arith.constant 0 : index
    %c0_7 = arith.constant 0 : index
    %19 = vector.load %arg3[%c0_6, %c0_7] : memref<1x96xf32, #tpu.memory_space<vmem>>, vector<1x96xf32>
    %c0_8 = arith.constant 0 : index
    %c0_9 = arith.constant 0 : index
    %20 = vector.load %arg4[%c0_8, %c0_9] : memref<1x96xf32, #tpu.memory_space<vmem>>, vector<1x96xf32>
    %21 = vector.broadcast %19 : vector<1x96xf32> to vector<1024x96xf32>
    %22 = arith.mulf %18, %21 : vector<1024x96xf32>
    %23 = vector.broadcast %20 : vector<1x96xf32> to vector<1024x96xf32>
    %24 = arith.addf %22, %23 : vector<1024x96xf32>
    %c0_10 = arith.constant 0 : index
    %c0_11 = arith.constant 0 : index
    %c0_12 = arith.constant 0 : index
    %25 = vector.load %arg5[%c0_10, %c0_11, %c0_12] : memref<1x1024x96xf32, #tpu.memory_space<vmem>>, vector<1x1024x96xf32>
    %26 = vector.shape_cast %25 : vector<1x1024x96xf32> to vector<1024x96xf32>
    %27 = vector.shape_cast %24 : vector<1024x96xf32> to vector<1x1024x96xf32>
    tpu.vector_store %arg5[%c0_10, %c0_11, %c0_12], %27 {strides = array<i32>} : memref<1x1024x96xf32, #tpu.memory_space<vmem>>, vector<1x1024x96xf32>,
    return
  }
  func.func @transform_0(%arg0: i32, %arg1: i32) -> (i32, i32, i32) {
    %c0_i32 = arith.constant 0 : i32
    %c0_i32_0 = arith.constant 0 : i32
    return %arg0, %c0_i32, %arg1 : i32, i32, i32
  }
  func.func @transform_1(%arg0: i32, %arg1: i32) -> (i32, i32) {
    %c0_i32 = arith.constant 0 : i32
    %c0_i32_0 = arith.constant 0 : i32
    %c0_i32_1 = arith.constant 0 : i32
    return %c0_i32, %c0_i32_0 : i32, i32
  }
  func.func @transform_2(%arg0: i32, %arg1: i32) -> (i32, i32) {
    %c0_i32 = arith.constant 0 : i32
    %c0_i32_0 = arith.constant 0 : i32
    %c0_i32_1 = arith.constant 0 : i32
    return %c0_i32, %c0_i32_0 : i32, i32
  }
  func.func @transform_3(%arg0: i32, %arg1: i32) -> (i32, i32, i32) {
    %c0_i32 = arith.constant 0 : i32
    %c0_i32_0 = arith.constant 0 : i32
    return %arg0, %arg1, %c0_i32 : i32, i32, i32
  }
}

</mosaic_0001>

<bundles_post_ra>
// kernel: patch_embed.1
= control target key start
LH: loop header
LB: loop body
LE: loop exit
PB: predicated region body
PF: predicated region fallthrough
CT: control target
= control target key end

     0   :  { %s1742_s12 = smov 0   ;;  %s1744_s13 = smov 0   ;;  %s3499_s0 = inlined_call_operand.vmem [shape: f32[2,96,1024], index: 0, kind: input, shape index: {}]   ;;  %s3500_s1 = inlined_call_operand.vmem [shape: f32[1,96], index: 1, kind: input, shape index: {}]   ;;  %s3501_s2 = inlined_call_operand.vmem [shape: f32[1,96], index: 2, kind: input, shape index: {}]   ;;  %s3502_s3 = inlined_call_operand.vmem [shape: f32[2,1024,96], index: 3, kind: output, shape index: {}]  }
   0x1   :  { %s1746_s14 = smov 0  }
   0x2 LB: > { %s25_s15 = sadd.s32 1, %s1716_s13  ;;  %p1645_p0 = scmp.ge.s32.totalorder %s1720_s14, 1  ;;  %s1720_s14 = sphi %s1746_s14, %s13_s14   ;;  %s1716_s13 = sphi %s1744_s13, %s3657_s13   ;;  %s1712_s12 = sphi %s1742_s12, %s3656_s12  }
   0x3   : > { %p27_p1 = scmp.ge.s32.totalorder %s25_s15, 2  ;;  %p158_p2 = scmp.lt.s32.totalorder %s1720_s14, 3 }
   0x5   : > { %s3659_s15 = smov (%p27_p1, %s25_s15), 0  ;;  %p159_p3 = pnand %p1645_p0, %p158_p2 }
   0x7   : > { %162 = sbr.rel (%p159_p3) target bundleno = 508 (0x1fc), region = 32 }
   0xe   : > { %p191_p4 = scmp.lt.s32.totalorder %s1712_s12, 1  ;;  %vm1425_vm0 = vcmask 785408  }
  0x10   : > { %s3661_s12 = smov (!%p191_p4, %s1712_s12), 1 }
  0x11   : > { %s1654_s16 = smul.u32 768, %s3661_s12  ;;  %s1653_s22 = sshll.u32 %s3661_s12, 10 }
  0x12   : > { %s2861_s27 = scalar_lea.vmem %s3502_s3, %s1653_s22 }
  0x13   : > { %s1766_s19 = scalar_lea.vmem %s3499_s0, %s1654_s16 }
  0x14   : > { %v1769_v0 = vld [vmem:[%s1766_s19 + $0x8] sm:$0xff]  ;;  %v1787_v7 = vld [vmem:[%s1766_s19] sm:$0xff]  ;;  %v1813_v18 = vld [vmem:[%s1766_s19 + $0x18] sm:$0xff] }
  0x15   : > { %v1772_v1 = vld [vmem:[%s1766_s19 + $0x48] sm:$0xff]  ;;  %v1790_v8 = vld [vmem:[%s1766_s19 + $0x40] sm:$0xff]  ;;  %v1816_v19 = vld [vmem:[%s1766_s19 + $0x58] sm:$0xff] }
  0x16   : > { %v1775_v2 = vld [vmem:[%s1766_s19 + $0x88] sm:$0xff]  ;;  %v323_v3 = vadd.f32 %v1772_v1, %v1769_v0  ;;  %v1793_v9 = vld [vmem:[%s1766_s19 + $0x80] sm:$0xff]  ;;  %v306_v11 = vadd.f32 %v1790_v8, %v1787_v7  ;;  %v1819_v20 = vld [vmem:[%s1766_s19 + $0x98] sm:$0xff]  ;;  %v357_v23 = vadd.f32 %v1816_v19, %v1813_v18 }
  0x17   : > { %v1780_v4 = vld [vmem:[%s1766_s19 + $0xc8] sm:$0xff]  ;;  %v1802_v13 = vld [vmem:[%s1766_s19 + $0xc0] sm:$0xff]  ;;  %v1832_v26 = vld [vmem:[%s1766_s19 + $0xd8] sm:$0xff] }
  0x18   : > { %v1783_v5 = vld [vmem:[%s1766_s19 + $0x108] sm:$0xff]  ;;  %v324_v6 = vadd.f32 %v323_v3, %v1775_v2  ;;  %v1809_v16 = vld [vmem:[%s1766_s19 + $0x100] sm:$0xff]  ;;  %v307_v17 = vadd.f32 %v306_v11, %v1793_v9  ;;  %v1843_v31 = vld [vmem:[%s1766_s19 + $0x118] sm:$0xff]  ;;  %v358_v32 = vadd.f32 %v357_v23, %v1819_v20 }
  0x19   : > { %v1799_v12 = vld [vmem:[%s1766_s19 + $0x148] sm:$0xff]  ;;  %v1829_v25 = vld [vmem:[%s1766_s19 + $0x140] sm:$0xff]  ;;  %v1847_v33 = vld [vmem:[%s1766_s19 + $0x10] sm:$0xff] }
  0x1a   : > { %v325_v10 = vadd.f32 %v324_v6, %v1780_v4  ;;  %v1805_v14 = vld [vmem:[%s1766_s19 + $0x188] sm:$0xff]  ;;  %v308_v22 = vadd.f32 %v307_v17, %v1802_v13  ;;  %v1839_v29 = vld [vmem:[%s1766_s19 + $0x180] sm:$0xff]  ;;  %v1850_v34 = vld [vmem:[%s1766_s19 + $0x50] sm:$0xff]  ;;  %v359_v39 = vadd.f32 %v358_v32, %v1832_v26 }
  0x1b   : > { %v1826_v24 = vld [vmem:[%s1766_s19 + $0x1c8] sm:$0xff]  ;;  %v1853_v35 = vld [vmem:[%s1766_s19 + $0x90] sm:$0xff]  ;;  %v340_v40 = vadd.f32 %v1850_v34, %v1847_v33  ;;  %v1864_v41 = vld [vmem:[%s1766_s19 + $0x1c0] sm:$0xff] }
  0x1c   : > { %v326_v15 = vadd.f32 %v325_v10, %v1783_v5  ;;  %v1835_v27 = vld [vmem:[%s1766_s19 + $0x208] sm:$0xff]  ;;  %v309_v30 = vadd.f32 %v308_v22, %v1809_v16  ;;  %v1867_v42 = vld [vmem:[%s1766_s19 + $0x158] sm:$0xff]  ;;  %v1870_v43 = vld [vmem:[%s1766_s19 + $0xd0] sm:$0xff]  ;;  %v360_v47 = vadd.f32 %v359_v39, %v1843_v31 }
  0x1d   : > { %v1856_v36 = vld [vmem:[%s1766_s19 + $0x248] sm:$0xff]  ;;  %v341_v48 = vadd.f32 %v340_v40, %v1853_v35  ;;  %v1880_v49 = vld [vmem:[%s1766_s19 + $0x200] sm:$0xff]  ;;  %v1883_v50 = vld [vmem:[%s1766_s19 + $0x198] sm:$0xff] }
  0x1e   : > { %v327_v21 = vadd.f32 %v326_v15, %v1799_v12  ;;  %v310_v38 = vadd.f32 %v309_v30, %v1829_v25  ;;  %v1873_v44 = vld [vmem:[%s1766_s19 + $0x288] sm:$0xff]  ;;  %v1886_v51 = vld [vmem:[%s1766_s19 + $0x110] sm:$0xff]  ;;  %v361_v55 = vadd.f32 %v360_v47, %v1867_v42  ;;  %v1896_v57 = vld [vmem:[%s1766_s19 + $0x240] sm:$0xff] }
  0x1f   : > { %v1889_v52 = vld [vmem:[%s1766_s19 + $0x2c8] sm:$0xff]  ;;  %v342_v56 = vadd.f32 %v341_v48, %v1870_v43  ;;  %v1899_v58 = vld [vmem:[%s1766_s19 + $0x1d8] sm:$0xff]  ;;  %v1902_v59 = vld [vmem:[%s1766_s19 + $0x150] sm:$0xff] }
  0x20   : > { %v328_v28 = vadd.f32 %v327_v21, %v1805_v14  ;;  %v311_v46 = vadd.f32 %v310_v38, %v1839_v29  ;;  %v362_v62 = vadd.f32 %v361_v55, %v1883_v50  ;;  %v1909_v3 = vld [vmem:[%s1766_s19 + $0x280] sm:$0xff]  ;;  %v1912_v6 = vld [vmem:[%s1766_s19 + $0x218] sm:$0xff]  ;;  %v1915_v10 = vld [vmem:[%s1766_s19 + $0x190] sm:$0xff] }
  0x21   : > { %v343_v63 = vadd.f32 %v342_v56, %v1886_v51  ;;  %v1922_v22 = vld [vmem:[%s1766_s19 + $0x2c0] sm:$0xff]  ;;  %v1925_v23 = vld [vmem:[%s1766_s19 + $0x258] sm:$0xff]  ;;  %v1939_v47 = vld [vmem:[%s1766_s19 + $0x210] sm:$0xff] }
  0x22   : > { %v329_v37 = vadd.f32 %v328_v28, %v1826_v24  ;;  %v312_v54 = vadd.f32 %v311_v46, %v1864_v41  ;;  %v363_v17 = vadd.f32 %v362_v62, %v1899_v58  ;;  %v1928_v28 = vld [vmem:[%s1766_s19 + $0x1d0] sm:$0xff]  ;;  %v1934_v39 = vld [vmem:[%s1766_s19 + $0x298] sm:$0xff] }
  0x23   : > { %v344_v21 = vadd.f32 %v343_v63, %v1902_v59  ;;  %v1943_v55 = vld [vmem:[%s1766_s19 + $0x2d8] sm:$0xff]  ;;  %v1948_v63 = vld [vmem:[%s1766_s19 + $0x250] sm:$0xff] }
  0x24   : > { %v330_v45 = vadd.f32 %v329_v37, %v1835_v27  ;;  %v313_v61 = vadd.f32 %v312_v54, %v1880_v49  ;;  %v364_v37 = vadd.f32 %v363_v17, %v1912_v6  ;;  %3554 = vst [vmem:[#allocation2_spill] sm:$0xff] %v1948_v63 }
  0x25   : > { %v345_v38 = vadd.f32 %v344_v21, %v1915_v10 }
  0x26   : > { %v331_v53 = vadd.f32 %v330_v45, %v1856_v36  ;;  %v314_v15 = vadd.f32 %v313_v61, %v1896_v57  ;;  %v365_v46 = vadd.f32 %v364_v37, %v1925_v23 }
  0x27   : > { %v346_v48 = vadd.f32 %v345_v38, %v1928_v28 }
  0x28   : > { %v332_v60 = vadd.f32 %v331_v53, %v1873_v44  ;;  %v315_v32 = vadd.f32 %v314_v15, %v1909_v3  ;;  %v366_v56 = vadd.f32 %v365_v46, %v1934_v39 }
  0x2a   : > { %v333_v11 = vadd.f32 %v332_v60, %v1889_v52  ;;  %v316_v45 = vadd.f32 %v315_v32, %v1922_v22  ;;  %v347_v60 = vadd.f32 %v346_v48, %v1939_v47  ;;  %v1953_v32 = vld [vmem:[%s1766_s19 + $0x290] sm:$0xff]  ;;  %v1958_v48 = vld [vmem:[%s1766_s19 + $0x28] sm:$0xff] }
  0x2b   : > { %3555 = vst [vmem:[#allocation3_spill] sm:$0xff] %v1953_v32  ;;  %3556 = vst [vmem:[#allocation4_spill] sm:$0xff] %v1958_v48 }
  0x2c   : > { %v334_v30 = vrot.slane %v333_v11, 4  ;;  %v317_v54 = vrot.slane %v316_v45, 4  ;;  %v348_v21 = vadd.f32 %v347_v60, %v1948_v63  ;;  %v1977_v60 = vld [vmem:[%s1766_s19 + $0x2d0] sm:$0xff] }
  0x2d   : > { %3559 = vst [vmem:[#allocation7_spill] sm:$0xff] %v1977_v60 }
  0x2e   : > { %v335_v40 = vadd.f32 %v334_v30, %v333_v11  ;;  %v318_v62 = vadd.f32 %v317_v54, %v316_v45  ;;  %v367_v11 = vadd.f32 %v366_v56, %v1943_v55  ;;  %v349_v45 = vadd.f32 %v348_v21, %v1953_v32 }
  0x30   : > { %v336_v53 = vrot.slane %v335_v40, 2  ;;  %v319_v17 = vrot.slane %v318_v62, 2  ;;  %v368_v37 = vrot.slane %v367_v11, 4 }
  0x32   : > { %v337_v61 = vadd.f32 %v336_v53, %v335_v40  ;;  %v320_v46 = vadd.f32 %v319_v17, %v318_v62  ;;  %v1961_v40 = vld [vmem:[%s1766_s19 + $0x68] sm:$0xff] }
  0x33   : > { %3557 = vst [vmem:[#allocation5_spill] sm:$0xff] %v1961_v40  ;;  %v391_v62 = vadd.f32 %v1961_v40, %v1958_v48  ;;  %v1986_v17 = vld [vmem:[%s1766_s19 + $0xa8] sm:$0xff] }
  0x34   : > { %v338_v15 = vrot.slane %v337_v61, 1  ;;  %3561 = vst [vmem:[#allocation9_spill] sm:$0xff] %v1986_v17 }
  0x36   : > { %v339_v30 = vadd.f32 %v338_v15, %v337_v61  ;;  %v369_v61 = vadd.f32 %v368_v37, %v367_v11  ;;  %v350_v11 = vadd.f32 %v349_v45, %v1977_v60  ;;  %v392_v37 = vadd.f32 %v391_v62, %v1986_v17  ;;  %v2007_v60 = vld [vmem:[%s1766_s19 + $0xe8] sm:$0xff] }
  0x37   : > { %3562 = vst [vmem:[#allocation10_spill] sm:$0xff] %v2007_v60 }
  0x38   : > { %v1955_v38 = vmul.f32 0.010416667, %v339_v30  ;;  %v370_v30 = vrot.slane %v369_v61, 2 }
  0x3a   : > { %v1966_v53 = vsub.f32 %v1769_v0, %v1955_v38  ;;  %v1970_v54 = vsub.f32 %v1772_v1, %v1955_v38  ;;  %v1974_v56 = vsub.f32 %v1775_v2, %v1955_v38  ;;  %v1983_v15 = vsub.f32 %v1780_v4, %v1955_v38 }
  0x3b   : > { %v321_v0 = vrot.slane %v320_v46, 1  ;;  %v1995_v21 = vsub.f32 %v1783_v5, %v1955_v38  ;;  %v2002_v40 = vsub.f32 %v1799_v12, %v1955_v38  ;;  %v351_v5 = vrot.slane %v350_v11, 4  ;;  %v2018_v12 = vld [vmem:[%s1766_s19 + $0x20] sm:$0xff] }
  0x3c   : > { %3558 = vst [vmem:[#allocation6_spill] sm:$0xff] %v1974_v56  ;;  %3560 = vst [vmem:[#allocation8_spill] sm:$0xff] %v1983_v15  ;;  %v548_v1 = vmul.f32 %v1966_v53, %v1966_v53  ;;  %v556_v2 = vmul.f32 %v1970_v54, %v1970_v54  ;;  %v564_v4 = vmul.f32 %v1974_v56, %v1974_v56 }
  0x3d   : > { %v572_v48 = vmul.f32 %v1983_v15, %v1983_v15  ;;  %v322_v45 = vadd.f32 %v321_v0, %v320_v46  ;;  %v2011_v63 = vsub.f32 %v1805_v14, %v1955_v38  ;;  %v580_v62 = vmul.f32 %v1995_v21, %v1995_v21  ;;  %3564 = vst [vmem:[#allocation12_spill] sm:$0xff] %v2018_v12  ;;  %v2021_v15 = vld [vmem:[%s1766_s19 + $0x60] sm:$0xff] }
  0x3e   : > { %v660_v32 = vadd.f32 %v556_v2, %v548_v1  ;;  %3565 = vst [vmem:[#allocation13_spill] sm:$0xff] %v2021_v15  ;;  %v2025_v46 = vsub.f32 %v1826_v24, %v1955_v38  ;;  %v371_v0 = vadd.f32 %v370_v30, %v369_v61  ;;  %v393_v1 = vadd.f32 %v392_v37, %v2007_v60  ;;  %v2043_v24 = vld [vmem:[%s1766_s19 + $0x128] sm:$0xff]  ;;  %v2054_v30 = vld [vmem:[%s1766_s19 + $0xa0] sm:$0xff] }
  0x3f   : > { %3563 = vst [vmem:[#allocation11_spill] sm:$0xff] %v2011_v63  ;;  %v2015_v56 = vmul.f32 0.010416667, %v322_v45  ;;  %v588_v14 = vmul.f32 %v2002_v40, %v2002_v40  ;;  %3567 = vst [vmem:[#allocation15_spill] sm:$0xff] %v2043_v24  ;;  %v374_v61 = vadd.f32 %v2021_v15, %v2018_v12  ;;  %v2078_v60 = vld [vmem:[%s1766_s19 + $0x168] sm:$0xff] }
  0x40   : > { %v661_v17 = vadd.f32 %v660_v32, %v564_v4  ;;  %3566 = vst [vmem:[#allocation14_spill] sm:$0xff] %v2025_v46  ;;  %3569 = vst [vmem:[#allocation17_spill] sm:$0xff] %v2054_v30  ;;  %v372_v12 = vrot.slane %v371_v0, 1 }
  0x41   : > { %v2032_v32 = vsub.f32 %v1787_v7, %v2015_v56  ;;  %v2036_v4 = vsub.f32 %v1790_v8, %v2015_v56  ;;  %v2040_v45 = vsub.f32 %v1793_v9, %v2015_v56  ;;  %v596_v7 = vmul.f32 %v2011_v63, %v2011_v63 }
  0x42   : > { %v662_v2 = vadd.f32 %v661_v17, %v572_v48  ;;  %v2049_v48 = vsub.f32 %v1835_v27, %v1955_v38  ;;  %v352_v8 = vadd.f32 %v351_v5, %v350_v11  ;;  %v2058_v9 = vsub.f32 %v1802_v13, %v2015_v56 }
  0x43   : > { %v547_v37 = vmul.f32 %v2032_v32, %v2032_v32  ;;  %v555_v15 = vmul.f32 %v2036_v4, %v2036_v4  ;;  %v2066_v27 = vsub.f32 %v1856_v36, %v1955_v38  ;;  %v604_v11 = vmul.f32 %v2025_v46, %v2025_v46 }
  0x44   : > { %3568 = vst [vmem:[#allocation16_spill] sm:$0xff] %v2049_v48  ;;  %v663_v17 = vadd.f32 %v662_v2, %v580_v62  ;;  %3570 = vst [vmem:[#allocation18_spill] sm:$0xff] %v2058_v9  ;;  %v394_v62 = vadd.f32 %v393_v1, %v2043_v24  ;;  %v2073_v13 = vsub.f32 %v1809_v16, %v2015_v56 }
  0x45   : > { %v563_v2 = vmul.f32 %v2040_v45, %v2040_v45  ;;  %v375_v63 = vadd.f32 %v374_v61, %v2054_v30  ;;  %v2083_v36 = vsub.f32 %v1873_v44, %v1955_v38  ;;  %v2089_v16 = vsub.f32 %v1829_v25, %v2015_v56 }
  0x46   : > { %v664_v5 = vadd.f32 %v663_v17, %v588_v14  ;;  %v612_v14 = vmul.f32 %v2049_v48, %v2049_v48  ;;  %v353_v17 = vrot.slane %v352_v8, 2  ;;  %v571_v24 = vmul.f32 %v2058_v9, %v2058_v9 }
  0x47   : > { %v643_v46 = vadd.f32 %v555_v15, %v547_v37  ;;  %v373_v61 = vadd.f32 %v372_v12, %v371_v0  ;;  %v2095_v44 = vsub.f32 %v1889_v52, %v1955_v38  ;;  %v620_v30 = vmul.f32 %v2066_v27, %v2066_v27  ;;  %v2109_v12 = vld [vmem:[%s1766_s19 + $0x1a8] sm:$0xff]  ;;  %v2112_v52 = vld [vmem:[%s1766_s19 + $0xe0] sm:$0xff] }
  0x48   : > { %v665_v1 = vadd.f32 %v664_v5, %v596_v7  ;;  %v395_v7 = vadd.f32 %v394_v62, %v2078_v60  ;;  %v2102_v5 = vsub.f32 %v1839_v29, %v2015_v56  ;;  %v579_v25 = vmul.f32 %v2073_v13, %v2073_v13  ;;  %3571 = vst [vmem:[#allocation19_spill] sm:$0xff] %v2109_v12 }
  0x49   : > { %v644_v9 = vadd.f32 %v643_v46, %v563_v2  ;;  %v2106_v15 = vmul.f32 0.010416667, %v373_v61  ;;  %v628_v38 = vmul.f32 %v2083_v36, %v2083_v36  ;;  %v2118_v29 = vsub.f32 %v1864_v41, %v2015_v56 }
  0x4a   : > { %v666_v48 = vadd.f32 %v665_v1, %v604_v11  ;;  %v354_v37 = vadd.f32 %v353_v17, %v352_v8  ;;  %v587_v46 = vmul.f32 %v2089_v16, %v2089_v16  ;;  %v396_v41 = vadd.f32 %v395_v7, %v2109_v12  ;;  %v2148_v17 = vld [vmem:[%s1766_s19 + $0x120] sm:$0xff] }
  0x4b   : > { %v645_v11 = vadd.f32 %v644_v9, %v571_v24  ;;  %v2124_v62 = vsub.f32 %v1813_v18, %v2106_v15  ;;  %v2128_v2 = vsub.f32 %v1816_v19, %v2106_v15  ;;  %v376_v8 = vadd.f32 %v375_v63, %v2112_v52  ;;  %v2145_v9 = vld [vmem:[%s1766_s19 + $0x1e8] sm:$0xff]  ;;  %3576 = vst [vmem:[#allocation24_spill] sm:$0xff] %v2148_v17 }
  0x4c   : > { %v667_v0 = vadd.f32 %v666_v48, %v612_v14  ;;  %v636_v48 = vmul.f32 %v2095_v44, %v2095_v44  ;;  %v2136_v1 = vsub.f32 %v1880_v49, %v2015_v56  ;;  %v595_v18 = vmul.f32 %v2102_v5, %v2102_v5  ;;  %3575 = vst [vmem:[#allocation23_spill] sm:$0xff] %v2145_v9 }
  0x4d   : > { %3572 = vst [vmem:[#allocation20_spill] sm:$0xff] %v2124_v62  ;;  %3573 = vst [vmem:[#allocation21_spill] sm:$0xff] %v2128_v2  ;;  %v646_v24 = vadd.f32 %v645_v11, %v579_v25  ;;  %v2142_v19 = vsub.f32 %v1819_v20, %v2106_v15  ;;  %v2152_v63 = vsub.f32 %v1896_v57, %v2015_v56  ;;  %v355_v61 = vrot.slane %v354_v37, 1 }
  0x4e   : > { %v668_v14 = vadd.f32 %v667_v0, %v620_v30  ;;  %v603_v49 = vmul.f32 %v2118_v29, %v2118_v29  ;;  %v2158_v25 = vsub.f32 %v1832_v26, %v2106_v15  ;;  %v550_v20 = vmul.f32 %v2124_v62, %v2124_v62  ;;  %v2175_v62 = vld [vmem:[%s1766_s19 + $0x160] sm:$0xff] }
  0x4f   : > { %3574 = vst [vmem:[#allocation22_spill] sm:$0xff] %v2142_v19  ;;  %3577 = vst [vmem:[#allocation25_spill] sm:$0xff] %v2152_v63  ;;  %v647_v7 = vadd.f32 %v646_v24, %v587_v46  ;;  %v558_v0 = vmul.f32 %v2128_v2, %v2128_v2  ;;  %v397_v57 = vadd.f32 %v396_v41, %v2145_v9 }
  0x50   : > { %v669_v30 = vadd.f32 %v668_v14, %v628_v38  ;;  %v377_v11 = vadd.f32 %v376_v8, %v2148_v17  ;;  %v2168_v14 = vsub.f32 %v1909_v3, %v2015_v56  ;;  %v611_v26 = vmul.f32 %v2136_v1, %v2136_v1 }
  0x51   : > { %v648_v46 = vadd.f32 %v647_v7, %v595_v18  ;;  %v566_v24 = vmul.f32 %v2142_v19, %v2142_v19  ;;  %v619_v41 = vmul.f32 %v2152_v63, %v2152_v63  ;;  %v2185_v3 = vsub.f32 %v1843_v31, %v2106_v15  ;;  %v2190_v19 = vld [vmem:[%s1766_s19 + $0x228] sm:$0xff] }
  0x52   : > { %v670_v38 = vadd.f32 %v669_v30, %v636_v48  ;;  %v2179_v48 = vsub.f32 %v1922_v22, %v2015_v56  ;;  %v574_v18 = vmul.f32 %v2158_v25, %v2158_v25  ;;  %v694_v30 = vadd.f32 %v558_v0, %v550_v20 }
  0x53   : > { %v649_v8 = vadd.f32 %v648_v46, %v603_v49  ;;  %v356_v7 = vadd.f32 %v355_v61, %v354_v37  ;;  %v378_v22 = vadd.f32 %v377_v11, %v2175_v62  ;;  %v627_v56 = vmul.f32 %v2168_v14, %v2168_v14  ;;  %v2201_v61 = vld [vmem:[%s1766_s19 + $0x1a0] sm:$0xff]  ;;  %v2210_v11 = vld [vmem:[%s1766_s19 + $0x268] sm:$0xff] }
  0x54   : > { %v671_v2 = vrot.slane %v670_v38, 4  ;;  %v695_v63 = vadd.f32 %v694_v30, %v566_v24  ;;  %v635_v49 = vmul.f32 %v2179_v48, %v2179_v48  ;;  %v398_v37 = vadd.f32 %v397_v57, %v2190_v19 }
  0x55   : > { %v650_v17 = vadd.f32 %v649_v8, %v611_v26  ;;  %v2195_v12 = vmul.f32 0.010416667, %v356_v7  ;;  %v582_v0 = vmul.f32 %v2185_v3, %v2185_v3  ;;  %v2231_v8 = vsub.f32 %v1883_v50, %v2106_v15 }
  0x56   : > { %v672_v9 = vadd.f32 %v671_v2, %v670_v38  ;;  %v2205_v2 = vsub.f32 %v1867_v42, %v2106_v15  ;;  %v696_v38 = vadd.f32 %v695_v63, %v574_v18  ;;  %v379_v42 = vadd.f32 %v378_v22, %v2201_v61 }
  0x57   : > { %v651_v20 = vadd.f32 %v650_v17, %v619_v41  ;;  %v2214_v46 = vsub.f32 %v1847_v33, %v2195_v12  ;;  %v2218_v57 = vsub.f32 %v1850_v34, %v2195_v12  ;;  %v2223_v41 = vsub.f32 %v1853_v35, %v2195_v12 }
  0x58   : > { %v673_v31 = vrot.slane %v672_v9, 2  ;;  %3578 = vst [vmem:[#allocation26_spill] sm:$0xff] %v2205_v2  ;;  %v399_v63 = vadd.f32 %v398_v37, %v2210_v11  ;;  %v590_v34 = vmul.f32 %v2205_v2, %v2205_v2  ;;  %v697_v18 = vadd.f32 %v696_v38, %v582_v0 }
  0x59   : > { %v652_v17 = vadd.f32 %v651_v20, %v627_v56  ;;  %3579 = vst [vmem:[#allocation27_spill] sm:$0xff] %v2223_v41  ;;  %v2237_v7 = vsub.f32 %v1870_v43, %v2195_v12  ;;  %v549_v35 = vmul.f32 %v2214_v46, %v2214_v46  ;;  %v557_v22 = vmul.f32 %v2218_v57, %v2218_v57  ;;  %v2254_v20 = vld [vmem:[%s1766_s19 + $0x220] sm:$0xff] }
  0x5a   : > { %v674_v26 = vadd.f32 %v673_v31, %v672_v9  ;;  %v2227_v9 = vld [vmem:[%s1766_s19 + $0x1e0] sm:$0xff]  ;;  %v2244_v31 = vld [vmem:[%s1766_s19 + $0x2a8] sm:$0xff]  ;;  %v2249_v37 = vsub.f32 %v1886_v51, %v2195_v12  ;;  %v565_v43 = vmul.f32 %v2223_v41, %v2223_v41  ;;  %v2258_v38 = vsub.f32 %v1899_v58, %v2106_v15 }
  0x5b   : > { %v653_v33 = vadd.f32 %v652_v17, %v635_v49  ;;  %v380_v50 = vadd.f32 %v379_v42, %v2227_v9  ;;  %v698_v17 = vadd.f32 %v697_v18, %v590_v34  ;;  %v573_v51 = vmul.f32 %v2237_v7, %v2237_v7  ;;  %v2266_v41 = vld [vmem:[%s1766_s19 + $0x2e8] sm:$0xff] }
  0x5c   : > { %v675_v24 = vrot.slane %v674_v26, 1  ;;  %3580 = vst [vmem:[#allocation28_spill] sm:$0xff] %v2249_v37  ;;  %v2271_v58 = vsub.f32 %v1902_v59, %v2195_v12  ;;  %v581_v34 = vmul.f32 %v2249_v37, %v2249_v37  ;;  %v2287_v37 = vsub.f32 %v1915_v10, %v2195_v12 }
  0x5d   : > { %v654_v56 = vrot.slane %v653_v33, 4 }
  0x5e   : > { %v676_v30 = vadd.f32 %v675_v24, %v674_v26  ;;  %v598_v26 = vmul.f32 %v2231_v8, %v2231_v8  ;;  %v677_v24 = vadd.f32 %v557_v22, %v549_v35  ;;  %v2277_v35 = vsub.f32 %v1912_v6, %v2106_v15  ;;  %3581 = vst [vmem:[#allocation29_spill] sm:$0xff] %v2287_v37 }
  0x5f   : > { %v655_v0 = vadd.f32 %v654_v56, %v653_v33  ;;  %v381_v33 = vadd.f32 %v380_v50, %v2254_v20  ;;  %v2282_v50 = vld [vmem:[%s1766_s19 + $0x260] sm:$0xff] }
  0x60   : > { %v780_v49 = vmul.f32 0.010416667, %v676_v30  ;;  %v400_v30 = vadd.f32 %v399_v63, %v2244_v31  ;;  %v678_v18 = vadd.f32 %v677_v24, %v565_v43  ;;  %v606_v63 = vmul.f32 %v2258_v38, %v2258_v38  ;;  %v2299_v24 = vld [vmem:[%s1766_s19 + $0x2a0] sm:$0xff] }
  0x61   : > { %v656_v2 = vrot.slane %v655_v0, 2  ;;  %v699_v22 = vadd.f32 %v698_v17, %v598_v26  ;;  %v382_v6 = vadd.f32 %v381_v33, %v2282_v50  ;;  %v2294_v26 = vsub.f32 %v1925_v23, %v2106_v15 }
  0x62   : > { %v788_v42 = vadd.f32 1e-05, %v780_v49  ;;  %v679_v49 = vadd.f32 %v678_v18, %v573_v51  ;;  %v401_v59 = vadd.f32 %v400_v30, %v2266_v41  ;;  %v614_v17 = vmul.f32 %v2277_v35, %v2277_v35 }
  0x63   : > { %v657_v56 = vadd.f32 %v656_v2, %v655_v0  ;;  %v589_v2 = vmul.f32 %v2271_v58, %v2271_v58  ;;  %v700_v51 = vadd.f32 %v699_v22, %v606_v63  ;;  %v2303_v18 = vsub.f32 %v1928_v28, %v2195_v12 }
  0x64   : > { %1680 = vrsqrt.f32 %v788_v42  ;;  %v680_v43 = vadd.f32 %v679_v49, %v581_v34  ;;  %v402_v10 = vrot.slane %v401_v59, 4  ;;  %v597_v33 = vmul.f32 %v2287_v37, %v2287_v37 }
  0x65   : > { %v658_v42 = vrot.slane %v657_v56, 1  ;;  %3582 = vst [vmem:[#allocation30_spill] sm:$0xff] %v2303_v18  ;;  %v2310_v49 = vsub.f32 %v1934_v39, %v2106_v15  ;;  %v622_v63 = vmul.f32 %v2294_v26, %v2294_v26  ;;  %v701_v22 = vadd.f32 %v700_v51, %v614_v17 }
  0x66   : > { %v681_v34 = vadd.f32 %v680_v43, %v589_v2  ;;  %v403_v28 = vadd.f32 %v402_v10, %v401_v59  ;;  %v2323_v2 = vsub.f32 %v1939_v47, %v2195_v12  ;;  %v605_v39 = vmul.f32 %v2303_v18, %v2303_v18  ;;  %v3586_v10 = vld [vmem:[#allocation2_spill] sm:$0xff] }
  0x67   : > { %v659_v0 = vadd.f32 %v658_v42, %v657_v56  ;;  %v383_v56 = vadd.f32 %v382_v6, %v2299_v24  ;;  %3583 = vst [vmem:[#allocation31_spill] sm:$0xff] %v2310_v49  ;;  %v2315_v42 = vld [vmem:[%s1766_s19 + $0x2e0] sm:$0xff]  ;;  %v2332_v59 = vsub.f32 %v1943_v55, %v2106_v15  ;;  %v702_v51 = vadd.f32 %v701_v22, %v622_v63  ;;  %v3589_v63 = vld [vmem:[#allocation3_spill] sm:$0xff] }
  0x68   : > { %3584 = vst [vmem:[#allocation32_spill] sm:$0xff] %v2323_v2  ;;  %v682_v43 = vadd.f32 %v681_v34, %v597_v33  ;;  %v404_v47 = vrot.slane %v403_v28, 2  ;;  %v613_v33 = vmul.f32 %v2323_v2, %v2323_v2  ;;  %v2348_v22 = vsub.f32 %v3589_v63, %v2195_v12  ;;  %v3592_v63 = vld [vmem:[#allocation7_spill] sm:$0xff] }
  0x69   : > { %v779_v30 = vmul.f32 0.010416667, %v659_v0  ;;  %v384_v6 = vadd.f32 %v383_v56, %v2315_v42  ;;  %3585 = vst [vmem:[#allocation33_spill] sm:$0xff] %v2332_v59  ;;  %v638_v15 = vmul.f32 %v2332_v59, %v2332_v59 }
  0x6b   : > { %v787_v23 = vadd.f32 1e-05, %v779_v30  ;;  %v2338_v30 = vsub.f32 %v3586_v10, %v2195_v12  ;;  %v385_v56 = vrot.slane %v384_v6, 4 }
  0x6d   : > { %1682 = vrsqrt.f32 %v787_v23  ;;  %3587 = vst [vmem:[#allocation2_spill] sm:$0xff] %v2338_v30  ;;  %v405_v23 = vadd.f32 %v404_v47, %v403_v28  ;;  %v621_v10 = vmul.f32 %v2338_v30, %v2338_v30  ;;  %v386_v59 = vadd.f32 %v385_v56, %v384_v6  ;;  %v2360_v28 = vld [vmem:[%s1766_s19 + $0x78] sm:$0xff] }
  0x6e   : > { %v2317_v0 = vpop.eup %1680 }
  0x6f   : > { %v804_v37 = vmul.f32 %v2317_v0, %v1966_v53  ;;  %v812_v17 = vmul.f32 %v2317_v0, %v1970_v54  ;;  %v630_v53 = vmul.f32 %v2310_v49, %v2310_v49  ;;  %v3588_v54 = vld [vmem:[#allocation6_spill] sm:$0xff]  ;;  %v406_v47 = vrot.slane %v405_v23, 1  ;;  %v2424_v49 = vld [vmem:[%s1766_s19 + $0x178] sm:$0xff] }
  0x70   : > { %v820_v55 = vmul.f32 %v2317_v0, %v3588_v54  ;;  %3590 = vst [vmem:[#allocation6_spill] sm:$0xff] %v2348_v22  ;;  %v387_v56 = vrot.slane %v386_v59, 2 }
  0x71   : > { %931 = vxpose.xlu1.b32.start [1/12] (short) %v804_v37, 128  ;;  %v683_v37 = vadd.f32 %v682_v43, %v605_v39  ;;  %v703_v34 = vadd.f32 %v702_v51, %v630_v53  ;;  %v3591_v43 = vld [vmem:[#allocation8_spill] sm:$0xff]  ;;  %v2357_v53 = vld [vmem:[%s1766_s19 + $0x38] sm:$0xff] }
  0x73   : > { %v684_v2 = vadd.f32 %v683_v37, %v613_v33  ;;  %v704_v54 = vadd.f32 %v703_v34, %v638_v15  ;;  %v2366_v33 = vsub.f32 %v3592_v63, %v2195_v12  ;;  %v425_v15 = vadd.f32 %v2360_v28, %v2357_v53  ;;  %v2377_v12 = vld [vmem:[%s1766_s19 + $0xb8] sm:$0xff] }
  0x74   : > { %v388_v63 = vadd.f32 %v387_v56, %v386_v59  ;;  %v3597_v56 = vld [vmem:[#allocation4_spill] sm:$0xff] }
  0x75   : > { %932 = vxpose.xlu1.b32.cont [2/12] (short) %v812_v17, 128  ;;  %v828_v17 = vmul.f32 %v2317_v0, %v3591_v43  ;;  %3593 = vst [vmem:[#allocation3_spill] sm:$0xff] %v2366_v33  ;;  %v685_v6 = vadd.f32 %v684_v2, %v621_v10  ;;  %v705_v34 = vrot.slane %v704_v54, 4  ;;  %v407_v43 = vadd.f32 %v406_v47, %v405_v23  ;;  %v2387_v23 = vld [vmem:[%s1766_s19 + $0xf8] sm:$0xff] }
  0x76   : > { %v637_v2 = vmul.f32 %v2366_v33, %v2366_v33 }
  0x77   : > { %v2352_v39 = vpop.eup %1682  ;;  %v2389_v47 = vmul.f32 0.010416667, %v407_v43 }
  0x78   : > { %v803_v51 = vmul.f32 %v2352_v39, %v2032_v32  ;;  %v811_v37 = vmul.f32 %v2352_v39, %v2036_v4  ;;  %v836_v32 = vmul.f32 %v2317_v0, %v1995_v21  ;;  %v819_v4 = vmul.f32 %v2352_v39, %v2040_v45 }
  0x79   : > { %933 = vxpose.xlu1.b32.cont [3/12] (short) %v820_v55, 128  ;;  %v629_v55 = vmul.f32 %v2348_v22, %v2348_v22  ;;  %v844_v21 = vmul.f32 %v2317_v0, %v2002_v40  ;;  %v3595_v40 = vld [vmem:[#allocation11_spill] sm:$0xff]  ;;  %v2407_v43 = vsub.f32 %v3597_v56, %v2389_v47  ;;  %v3601_v56 = vld [vmem:[#allocation14_spill] sm:$0xff] }
  0x7a   : > { %899 = vxpose.xlu0.b32.start [1/12] (short) %v803_v51, 128  ;;  %v706_v51 = vadd.f32 %v705_v34, %v704_v54  ;;  %v852_v59 = vmul.f32 %v2317_v0, %v3595_v40  ;;  %v2403_v34 = vld [vmem:[%s1766_s19 + $0x138] sm:$0xff]  ;;  %v2419_v40 = vld [vmem:[%s1766_s19 + $0xb0] sm:$0xff]  ;;  %v860_v33 = vmul.f32 %v2317_v0, %v3601_v56  ;;  %3602 = vst [vmem:[#allocation11_spill] sm:$0xff] %v2424_v49 }
  0x7b   : > { %v686_v10 = vadd.f32 %v685_v6, %v629_v55  ;;  %v2395_v6 = vld [vmem:[%s1766_s19 + $0x30] sm:$0xff]  ;;  %3596 = vst [vmem:[#allocation8_spill] sm:$0xff] %v2403_v34  ;;  %3598 = vst [vmem:[#allocation7_spill] sm:$0xff] %v2407_v43 }
  0x7c   : > { %v707_v54 = vrot.slane %v706_v51, 2  ;;  %v3606_v56 = vld [vmem:[#allocation16_spill] sm:$0xff] }
  0x7d   : > { %934 = vxpose.xlu1.b32.cont [4/12] (short) %v828_v17, 128  ;;  %v426_v17 = vadd.f32 %v425_v15, %v2377_v12  ;;  %v687_v22 = vadd.f32 %v686_v10, %v637_v2  ;;  %v2398_v15 = vld [vmem:[%s1766_s19 + $0x70] sm:$0xff] }
  0x7e   : > { %900 = vxpose.xlu0.b32.cont [2/12] (short) %v811_v37, 128  ;;  %v3594_v37 = vld [vmem:[#allocation18_spill] sm:$0xff]  ;;  %v408_v10 = vadd.f32 %v2398_v15, %v2395_v6  ;;  %v708_v30 = vadd.f32 %v707_v54, %v706_v51  ;;  %v843_v51 = vmul.f32 %v2352_v39, %v2089_v16 }
  0x7f   : > { %v827_v45 = vmul.f32 %v2352_v39, %v3594_v37  ;;  %v427_v55 = vadd.f32 %v426_v17, %v2387_v23  ;;  %v835_v17 = vmul.f32 %v2352_v39, %v2073_v13  ;;  %v552_v13 = vmul.f32 %v2407_v43, %v2407_v43 }
  0x80   : > { %v709_v43 = vrot.slane %v708_v30, 1 }
  0x81   : > { %935 = vxpose.xlu1.b32.cont [5/12] (short) %v836_v32, 128  ;;  %v389_v32 = vrot.slane %v388_v63, 1  ;;  %v428_v37 = vadd.f32 %v427_v55, %v2403_v34 }
  0x82   : > { %901 = vxpose.xlu0.b32.cont [3/12] (short) %v819_v4, 128  ;;  %v3599_v4 = vld [vmem:[#allocation5_spill] sm:$0xff] }
  0x83   : > { %v2411_v2 = vsub.f32 %v3599_v4, %v2389_v47  ;;  %v390_v4 = vadd.f32 %v389_v32, %v388_v63  ;;  %v429_v63 = vadd.f32 %v428_v37, %v2424_v49  ;;  %v2439_v32 = vld [vmem:[%s1766_s19 + $0xf0] sm:$0xff]  ;;  %v710_v49 = vadd.f32 %v709_v43, %v708_v30 }
  0x84   : > { %3605 = vst [vmem:[#allocation5_spill] sm:$0xff] %v2439_v32  ;;  %v884_v43 = vmul.f32 %v2317_v0, %v2083_v36  ;;  %v2502_v36 = vsub.f32 %v2078_v60, %v2389_v47 }
  0x85   : > { %936 = vxpose.xlu1.b32.cont [6/12] (short) %v844_v21, 128  ;;  %3600 = vst [vmem:[#allocation18_spill] sm:$0xff] %v2411_v2  ;;  %v688_v21 = vrot.slane %v687_v22, 4  ;;  %v560_v55 = vmul.f32 %v2411_v2, %v2411_v2  ;;  %v2443_v34 = vmul.f32 0.010416667, %v390_v4  ;;  %v2446_v2 = vld [vmem:[%s1766_s19 + $0x1b8] sm:$0xff] }
  0x86   : > { %902 = vxpose.xlu0.b32.cont [4/12] (short) %v827_v45, 128  ;;  %v3603_v45 = vld [vmem:[#allocation9_spill] sm:$0xff]  ;;  %3607 = vst [vmem:[#allocation14_spill] sm:$0xff] %v2446_v2  ;;  %v430_v4 = vadd.f32 %v429_v63, %v2446_v2 }
  0x87   : > { %v2428_v18 = vsub.f32 %v3603_v45, %v2389_v47  ;;  %v689_v54 = vadd.f32 %v688_v21, %v687_v22  ;;  %v868_v45 = vmul.f32 %v2317_v0, %v3606_v56  ;;  %v728_v22 = vadd.f32 %v560_v55, %v552_v13  ;;  %v2459_v56 = vld [vmem:[%s1766_s19 + $0x130] sm:$0xff]  ;;  %v3611_v55 = vld [vmem:[#allocation13_spill] sm:$0xff] }
  0x89   : > { %937 = vxpose.xlu1.b32.cont [7/12] (short) %v852_v59, 128  ;;  %3604 = vst [vmem:[#allocation4_spill] sm:$0xff] %v2428_v18  ;;  %v409_v59 = vadd.f32 %v408_v10, %v2419_v40  ;;  %v3608_v10 = vld [vmem:[#allocation10_spill] sm:$0xff]  ;;  %v568_v16 = vmul.f32 %v2428_v18, %v2428_v18  ;;  %v690_v37 = vrot.slane %v689_v54, 2  ;;  %v3610_v18 = vld [vmem:[#allocation12_spill] sm:$0xff] }
  0x8a   : > { %903 = vxpose.xlu0.b32.cont [5/12] (short) %v835_v17, 128  ;;  %v2450_v17 = vsub.f32 %v3608_v10, %v2389_v47  ;;  %v876_v10 = vmul.f32 %v2317_v0, %v2066_v27  ;;  %v2465_v13 = vsub.f32 %v3610_v18, %v2443_v34  ;;  %v859_v18 = vmul.f32 %v2352_v39, %v2118_v29 }
  0x8b   : > { %v410_v21 = vadd.f32 %v409_v59, %v2439_v32  ;;  %v2469_v59 = vsub.f32 %v3611_v55, %v2443_v34  ;;  %v729_v27 = vadd.f32 %v728_v22, %v568_v16  ;;  %v691_v55 = vadd.f32 %v690_v37, %v689_v54  ;;  %v2487_v32 = vld [vmem:[%s1766_s19 + $0x170] sm:$0xff] }
  0x8c   : > { %3609 = vst [vmem:[#allocation9_spill] sm:$0xff] %v2450_v17  ;;  %v551_v22 = vmul.f32 %v2465_v13, %v2465_v13  ;;  %v892_v37 = vmul.f32 %v2317_v0, %v2095_v44  ;;  %v3617_v44 = vld [vmem:[#allocation19_spill] sm:$0xff] }
  0x8d   : > { %938 = vxpose.xlu1.b32.cont [8/12] (short) %v860_v33, 128  ;;  %v851_v33 = vmul.f32 %v2352_v39, %v2102_v5  ;;  %3612 = vst [vmem:[#allocation16_spill] sm:$0xff] %v2469_v59  ;;  %v2472_v5 = vld [vmem:[%s1766_s19 + $0x1f8] sm:$0xff]  ;;  %v411_v30 = vadd.f32 %v410_v21, %v2459_v56  ;;  %v559_v29 = vmul.f32 %v2469_v59, %v2469_v59  ;;  %v2513_v59 = vld [vmem:[%s1766_s19 + $0x1b0] sm:$0xff] }
  0x8e   : > { %904 = vxpose.xlu0.b32.cont [6/12] (short) %v843_v51, 128  ;;  %v3613_v51 = vld [vmem:[#allocation15_spill] sm:$0xff]  ;;  %v431_v2 = vadd.f32 %v430_v4, %v2472_v5  ;;  %v2498_v21 = vld [vmem:[%s1766_s19 + $0x238] sm:$0xff]  ;;  %v692_v4 = vrot.slane %v691_v55, 1  ;;  %v2526_v0 = vsub.f32 %v3617_v44, %v2389_v47  ;;  %v3619_v44 = vld [vmem:[#allocation24_spill] sm:$0xff] }
  0x8f   : > { %v2476_v63 = vsub.f32 %v3613_v51, %v2389_v47  ;;  %v782_v51 = vmul.f32 0.010416667, %v710_v49 }
  0x91   : > { %939 = vxpose.xlu1.b32.cont [9/12] (short) %v868_v45, 128  ;;  %3614 = vst [vmem:[#allocation10_spill] sm:$0xff] %v2476_v63  ;;  %v576_v45 = vmul.f32 %v2450_v17, %v2450_v17  ;;  %v3615_v17 = vld [vmem:[#allocation17_spill] sm:$0xff]  ;;  %v584_v49 = vmul.f32 %v2476_v63, %v2476_v63  ;;  %v790_v60 = vadd.f32 1e-05, %v782_v51  ;;  %v693_v63 = vadd.f32 %v692_v4, %v691_v55  ;;  %v3620_v55 = vld [vmem:[#allocation23_spill] sm:$0xff] }
  0x92   : > { %905 = vxpose.xlu0.b32.cont [7/12] (short) %v851_v33, 128  ;;  %v2491_v16 = vsub.f32 %v3615_v17, %v2443_v34  ;;  %v412_v17 = vadd.f32 %v411_v30, %v2487_v32  ;;  %v867_v33 = vmul.f32 %v2352_v39, %v2136_v1  ;;  %v711_v30 = vadd.f32 %v559_v29, %v551_v22  ;;  %v2522_v1 = vld [vmem:[%s1766_s19 + $0x278] sm:$0xff]  ;;  %v2535_v29 = vld [vmem:[%s1766_s19 + $0x1f0] sm:$0xff] }
  0x93   : > { %v730_v54 = vadd.f32 %v729_v27, %v576_v45  ;;  %v2517_v45 = vsub.f32 %v2112_v52, %v2443_v34  ;;  %v3618_v52 = vld [vmem:[#allocation25_spill] sm:$0xff]  ;;  %1684 = vrsqrt.f32 %v790_v60  ;;  %v600_v4 = vmul.f32 %v2526_v0, %v2526_v0 }
  0x94   : > { %3616 = vst [vmem:[#allocation12_spill] sm:$0xff] %v2491_v16  ;;  %v567_v27 = vmul.f32 %v2491_v16, %v2491_v16  ;;  %v875_v51 = vmul.f32 %v2352_v39, %v3618_v52  ;;  %v2539_v16 = vsub.f32 %v3619_v44, %v2443_v34  ;;  %v883_v60 = vmul.f32 %v2352_v39, %v2168_v14 }
  0x95   : > { %940 = vxpose.xlu1.b32.cont [10/12] (short) %v876_v10, 128  ;;  %v432_v10 = vadd.f32 %v431_v2, %v2498_v21  ;;  %v592_v2 = vmul.f32 %v2502_v36, %v2502_v36  ;;  %v781_v52 = vmul.f32 0.010416667, %v693_v63  ;;  %v2561_v44 = vsub.f32 %v2175_v62, %v2443_v34 }
  0x96   : > { %906 = vxpose.xlu0.b32.cont [8/12] (short) %v859_v18, 128  ;;  %v731_v18 = vadd.f32 %v730_v54, %v584_v49  ;;  %v575_v49 = vmul.f32 %v2517_v45, %v2517_v45  ;;  %v712_v54 = vadd.f32 %v711_v30, %v567_v27  ;;  %v2557_v30 = vld [vmem:[%s1766_s19 + $0x230] sm:$0xff]  ;;  %v891_v62 = vmul.f32 %v2352_v39, %v2179_v48 }
  0x97   : > { %v433_v22 = vadd.f32 %v432_v10, %v2522_v1 }
  0x99   : > { %941 = vxpose.xlu1.b32.cont [11/12] (short) %v884_v43, 128  ;;  %v413_v43 = vadd.f32 %v412_v17, %v2513_v59  ;;  %v2544_v17 = vld [vmem:[%s1766_s19 + $0x2b8] sm:$0xff] }
  0x9a   : > { %907 = vxpose.xlu0.b32.cont [9/12] (short) %v867_v33, 128  ;;  %v2548_v33 = vsub.f32 %v3620_v55, %v2389_v47  ;;  %v434_v27 = vadd.f32 %v433_v22, %v2544_v17  ;;  %v583_v55 = vmul.f32 %v2539_v16, %v2539_v16  ;;  %v789_v22 = vadd.f32 1e-05, %v781_v52  ;;  %v2597_v52 = vld [vmem:[%s1766_s19 + $0x2b0] sm:$0xff] }
  0x9b   : > { %v414_v10 = vadd.f32 %v413_v43, %v2535_v29  ;;  %v2570_v43 = vsub.f32 %v2190_v19, %v2389_v47  ;;  %v2583_v19 = vsub.f32 %v2201_v61, %v2443_v34 }
  0x9c   : > { %3621 = vst [vmem:[#allocation13_spill] sm:$0xff] %v2548_v33  ;;  %v608_v14 = vmul.f32 %v2548_v33, %v2548_v33  ;;  %v591_v33 = vmul.f32 %v2561_v44, %v2561_v44  ;;  %1686 = vrsqrt.f32 %v789_v22 }
  0x9d   : > { %942 = vxpose.xlu1.b32.end [12/12] (short) %v892_v37, 128  ;;  %v732_v37 = vadd.f32 %v731_v18, %v592_v2  ;;  %v713_v2 = vadd.f32 %v712_v54, %v575_v49  ;;  %v2566_v18 = vld [vmem:[%s1766_s19 + $0x2f8] sm:$0xff]  ;;  %3622 = vst [vmem:[#allocation15_spill] sm:$0xff] %v2570_v43  ;;  %v2579_v54 = vld [vmem:[%s1766_s19 + $0x270] sm:$0xff]  ;;  %3623 = vst [vmem:[#allocation17_spill] sm:$0xff] %v2583_v19  ;;  %v616_v48 = vmul.f32 %v2570_v43, %v2570_v43 }
  0x9e   : > { %908 = vxpose.xlu0.b32.cont [10/12] (short) %v875_v51, 128  ;;  %v415_v51 = vadd.f32 %v414_v10, %v2557_v30  ;;  %v435_v49 = vadd.f32 %v434_v27, %v2566_v18  ;;  %v2593_v10 = vpop.eup %1684  ;;  %v2601_v27 = vsub.f32 %v2227_v9, %v2443_v34  ;;  %v2615_v9 = vld [vmem:[%s1766_s19 + $0x2f0] sm:$0xff] }
  0x9f   : > { %v733_v63 = vadd.f32 %v732_v37, %v600_v4  ;;  %v714_v4 = vadd.f32 %v713_v2, %v583_v55  ;;  %v2589_v37 = vsub.f32 %v2210_v11, %v2389_v47  ;;  %v599_v11 = vmul.f32 %v2583_v19, %v2583_v19  ;;  %v3624_v2 = vld [vmem:[#allocation20_spill] sm:$0xff] }
  0xa0   : > { %v436_v61 = vrot.slane %v435_v49, 4  ;;  %v2619_v19 = vsub.f32 %v2254_v20, %v2443_v34 }
  0xa1   : > { %v734_v39 = vadd.f32 %v733_v63, %v608_v14  ;;  %v715_v55 = vadd.f32 %v714_v4, %v591_v33  ;;  %v806_v14 = vmul.f32 %v2593_v10, %v3624_v2  ;;  %v2609_v63 = vsub.f32 %v2244_v31, %v2389_v47  ;;  %v3626_v31 = vld [vmem:[#allocation21_spill] sm:$0xff] }
  0xa2   : > { %909 = vxpose.xlu0.b32.cont [11/12] (short) %v883_v60, 128  ;;  %v416_v60 = vadd.f32 %v415_v51, %v2579_v54  ;;  %v624_v51 = vmul.f32 %v2589_v37, %v2589_v37  ;;  %v437_v43 = vadd.f32 %v436_v61, %v435_v49  ;;  %v607_v33 = vmul.f32 %v2601_v27, %v2601_v27 }
  0xa3   : > { %3625 = vst [vmem:[#allocation19_spill] sm:$0xff] %v2609_v63  ;;  %v716_v4 = vadd.f32 %v715_v55, %v599_v11  ;;  %v814_v2 = vmul.f32 %v2593_v10, %v3626_v31  ;;  %v632_v49 = vmul.f32 %v2609_v63, %v2609_v63  ;;  %v2634_v61 = vsub.f32 %v2282_v50, %v2443_v34 }
  0xa4   : > { %v417_v22 = vadd.f32 %v416_v60, %v2597_v52  ;;  %v438_v20 = vrot.slane %v437_v43, 2  ;;  %v615_v11 = vmul.f32 %v2619_v19, %v2619_v19  ;;  %v2648_v63 = vsub.f32 %v2299_v24, %v2443_v34 }
  0xa5   : > { %v717_v55 = vadd.f32 %v716_v4, %v607_v33  ;;  %v623_v33 = vmul.f32 %v2634_v61, %v2634_v61 }
  0xa6   : > { %910 = vxpose.xlu0.b32.end [12/12] (short) %v891_v62, 128  ;;  %v735_v62 = vadd.f32 %v734_v39, %v616_v48  ;;  %v2627_v48 = vsub.f32 %v2266_v41, %v2389_v47  ;;  %v418_v60 = vadd.f32 %v417_v22, %v2615_v9  ;;  %v3628_v41 = vld [vmem:[#allocation22_spill] sm:$0xff]  ;;  %v439_v31 = vadd.f32 %v438_v20, %v437_v43 }
  0xa7   : > { %v822_v47 = vmul.f32 %v2593_v10, %v3628_v41  ;;  %v718_v4 = vadd.f32 %v717_v55, %v615_v11  ;;  %v631_v24 = vmul.f32 %v2648_v63, %v2648_v63  ;;  %v838_v20 = vmul.f32 %v2593_v10, %v2185_v3  ;;  %v3629_v55 = vld [vmem:[#allocation27_spill] sm:$0xff] }
  0xa8   : > { %3627 = vst [vmem:[#allocation25_spill] sm:$0xff] %v2627_v48  ;;  %v736_v39 = vadd.f32 %v735_v62, %v624_v51  ;;  %v640_v51 = vmul.f32 %v2627_v48, %v2627_v48  ;;  %v419_v22 = vrot.slane %v418_v60, 4 }
  0xaa   : > { %v737_v62 = vadd.f32 %v736_v39, %v632_v49  ;;  %v420_v48 = vadd.f32 %v419_v22, %v418_v60  ;;  %v440_v49 = vrot.slane %v439_v31, 1  ;;  %v719_v39 = vadd.f32 %v718_v4, %v623_v33 }
  0xab   : > { %v854_v33 = vmul.f32 %v2593_v10, %v2231_v8 }
  0xac   : > { %v738_v41 = vadd.f32 %v737_v62, %v640_v51  ;;  %v421_v11 = vrot.slane %v420_v48, 2  ;;  %v441_v60 = vadd.f32 %v440_v49, %v439_v31 }
  0xae   : > { %995 = vxpose.xlu1.b32.start [1/12] (short) %v806_v14, 128  ;;  %v2638_v14 = vpop.eup %1686  ;;  %v422_v22 = vadd.f32 %v421_v11, %v420_v48 }
  0xaf   : > { %v805_v50 = vmul.f32 %v2638_v14, %v2214_v46  ;;  %v813_v43 = vmul.f32 %v2638_v14, %v2218_v57  ;;  %v2658_v46 = vsub.f32 %v2315_v42, %v2443_v34  ;;  %v720_v42 = vadd.f32 %v719_v39, %v631_v24  ;;  %v3630_v34 = vld [vmem:[#allocation26_spill] sm:$0xff] }
  0xb0   : > { %v846_v51 = vmul.f32 %v2593_v10, %v3630_v34  ;;  %v829_v3 = vmul.f32 %v2638_v14, %v2237_v7  ;;  %v862_v24 = vmul.f32 %v2593_v10, %v2258_v38  ;;  %v870_v38 = vmul.f32 %v2593_v10, %v2277_v35 }
  0xb1   : > { %v639_v57 = vmul.f32 %v2658_v46, %v2658_v46  ;;  %v878_v35 = vmul.f32 %v2593_v10, %v2294_v26 }
  0xb2   : > { %996 = vxpose.xlu1.b32.cont [2/12] (short) %v814_v2, 128  ;;  %v830_v2 = vmul.f32 %v2593_v10, %v2158_v25  ;;  %v739_v25 = vrot.slane %v738_v41, 4 }
  0xb3   : > { %v721_v31 = vadd.f32 %v720_v42, %v639_v57  ;;  %v3632_v42 = vld [vmem:[#allocation29_spill] sm:$0xff] }
  0xb4   : > { %v740_v62 = vadd.f32 %v739_v25, %v738_v41  ;;  %v3631_v41 = vld [vmem:[#allocation28_spill] sm:$0xff]  ;;  %v845_v25 = vmul.f32 %v2638_v14, %v2271_v58  ;;  %v853_v58 = vmul.f32 %v2638_v14, %v3632_v42 }
  0xb5   : > { %v722_v7 = vrot.slane %v721_v31, 4 }
  0xb6   : > { %997 = vxpose.xlu1.b32.cont [3/12] (short) %v822_v47, 128  ;;  %v821_v47 = vmul.f32 %v2638_v14, %v3629_v55  ;;  %v741_v4 = vrot.slane %v740_v62, 2 }
  0xb7   : > { %963 = vxpose.xlu0.b32.start [1/12] (short) %v805_v50, 128  ;;  %v2670_v50 = vmul.f32 0.010416667, %v441_v60  ;;  %v723_v11 = vadd.f32 %v722_v7, %v721_v31 }
  0xb8   : > { %v742_v8 = vadd.f32 %v741_v4, %v740_v62  ;;  %v3634_v4 = vld [vmem:[#allocation30_spill] sm:$0xff] }
  0xb9   : > { %v2678_v49 = vsub.f32 %v2357_v53, %v2670_v50  ;;  %v2682_v48 = vsub.f32 %v2360_v28, %v2670_v50  ;;  %v724_v34 = vrot.slane %v723_v11, 2  ;;  %v861_v26 = vmul.f32 %v2638_v14, %v3634_v4 }
  0xba   : > { %998 = vxpose.xlu1.b32.cont [4/12] (short) %v830_v2, 128  ;;  %v423_v2 = vrot.slane %v422_v22, 1  ;;  %v743_v60 = vrot.slane %v742_v8, 1 }
  0xbb   : > { %964 = vxpose.xlu0.b32.cont [2/12] (short) %v813_v43, 128  ;;  %v837_v43 = vmul.f32 %v2638_v14, %v3631_v41  ;;  %v554_v53 = vmul.f32 %v2678_v49, %v2678_v49  ;;  %v562_v28 = vmul.f32 %v2682_v48, %v2682_v48 }
  0xbc   : > { %v424_v39 = vadd.f32 %v423_v2, %v422_v22  ;;  %v3633_v22 = vld [vmem:[#allocation8_spill] sm:$0xff]  ;;  %v725_v2 = vadd.f32 %v724_v34, %v723_v11 }
  0xbd   : > { %v762_v57 = vadd.f32 %v562_v28, %v554_v53 }
  0xbe   : > { %999 = vxpose.xlu1.b32.cont [5/12] (short) %v838_v20, 128  ;;  %v2690_v20 = vsub.f32 %v2377_v12, %v2670_v50  ;;  %v2700_v55 = vmul.f32 0.010416667, %v424_v39  ;;  %v2704_v12 = vsub.f32 %v2387_v23, %v2670_v50 }
  0xbf   : > { %965 = vxpose.xlu0.b32.cont [3/12] (short) %v821_v47, 128 }
  0xc0   : > { %v570_v47 = vmul.f32 %v2690_v20, %v2690_v20  ;;  %v2714_v62 = vsub.f32 %v2395_v6, %v2700_v55  ;;  %v2718_v23 = vsub.f32 %v2398_v15, %v2700_v55  ;;  %v578_v31 = vmul.f32 %v2704_v12, %v2704_v12  ;;  %v3635_v6 = vld [vmem:[#allocation31_spill] sm:$0xff] }
  0xc1   : > { %v886_v41 = vmul.f32 %v2593_v10, %v3635_v6  ;;  %v2732_v15 = vsub.f32 %v2419_v40, %v2700_v55  ;;  %v726_v40 = vrot.slane %v725_v2, 1 }
  0xc2   : > { %1000 = vxpose.xlu1.b32.cont [6/12] (short) %v846_v51, 128  ;;  %v744_v51 = vadd.f32 %v743_v60, %v742_v8  ;;  %v553_v7 = vmul.f32 %v2714_v62, %v2714_v62  ;;  %v3636_v8 = vld [vmem:[#allocation11_spill] sm:$0xff] }
  0xc3   : > { %966 = vxpose.xlu0.b32.cont [4/12] (short) %v829_v3, 128  ;;  %v2722_v3 = vsub.f32 %v3633_v22, %v2670_v50  ;;  %v2740_v39 = vsub.f32 %v3636_v8, %v2670_v50  ;;  %v727_v4 = vadd.f32 %v726_v40, %v725_v2  ;;  %v3642_v2 = vld [vmem:[#allocation6_spill] sm:$0xff] }
  0xc4   : > { %v885_v8 = vmul.f32 %v2638_v14, %v3642_v2 }
  0xc5   : > { %v586_v53 = vmul.f32 %v2722_v3, %v2722_v3  ;;  %v594_v22 = vmul.f32 %v2740_v39, %v2740_v39 }
  0xc6   : > { %1001 = vxpose.xlu1.b32.cont [7/12] (short) %v854_v33, 128  ;;  %v763_v33 = vadd.f32 %v762_v57, %v570_v47  ;;  %v3639_v57 = vld [vmem:[#allocation5_spill] sm:$0xff] }
  0xc7   : > { %967 = vxpose.xlu0.b32.cont [5/12] (short) %v837_v43, 128  ;;  %v784_v43 = vmul.f32 0.010416667, %v744_v51  ;;  %v2750_v42 = vsub.f32 %v3639_v57, %v2700_v55 }
  0xc8   : > { %v764_v28 = vadd.f32 %v763_v33, %v578_v31  ;;  %v3641_v33 = vld [vmem:[#allocation2_spill] sm:$0xff] }
  0xc9   : > { %v792_v47 = vadd.f32 1e-05, %v784_v43  ;;  %v577_v6 = vmul.f32 %v2750_v42, %v2750_v42  ;;  %v2770_v43 = vsub.f32 %v2472_v5, %v2670_v50  ;;  %v2784_v5 = vsub.f32 %v2498_v21, %v2670_v50 }
  0xca   : > { %1002 = vxpose.xlu1.b32.cont [8/12] (short) %v862_v24, 128  ;;  %v561_v24 = vmul.f32 %v2718_v23, %v2718_v23  ;;  %v765_v31 = vadd.f32 %v764_v28, %v586_v53  ;;  %v783_v53 = vmul.f32 0.010416667, %v727_v4  ;;  %v2800_v21 = vsub.f32 %v2522_v1, %v2670_v50 }
  0xcb   : > { %968 = vxpose.xlu0.b32.cont [6/12] (short) %v845_v25, 128  ;;  %v3637_v25 = vld [vmem:[#allocation32_spill] sm:$0xff]  ;;  %1688 = vrsqrt.f32 %v792_v47  ;;  %v2814_v1 = vsub.f32 %v2544_v17, %v2670_v50  ;;  %v2828_v17 = vsub.f32 %v2566_v18, %v2670_v50 }
  0xcc   : > { %v869_v11 = vmul.f32 %v2638_v14, %v3637_v25  ;;  %v745_v34 = vadd.f32 %v561_v24, %v553_v7  ;;  %v766_v24 = vadd.f32 %v765_v31, %v594_v22  ;;  %v791_v47 = vadd.f32 1e-05, %v783_v53 }
  0xcd   : > { %v2808_v31 = vsub.f32 %v2535_v29, %v2700_v55  ;;  %v626_v4 = vmul.f32 %v2800_v21, %v2800_v21  ;;  %v2822_v29 = vsub.f32 %v2557_v30, %v2700_v55  ;;  %v3646_v30 = vld [vmem:[#allocation4_spill] sm:$0xff] }
  0xce   : > { %1003 = vxpose.xlu1.b32.cont [9/12] (short) %v870_v38, 128  ;;  %v3638_v38 = vld [vmem:[#allocation33_spill] sm:$0xff]  ;;  %1690 = vrsqrt.f32 %v791_v47  ;;  %v2853_v47 = vld [vmem:[%s3501_s2] ss:$0 sm:$0xff] }
  0xcf   : > { %969 = vxpose.xlu0.b32.cont [7/12] (short) %v853_v58, 128  ;;  %v894_v60 = vmul.f32 %v2593_v10, %v3638_v38  ;;  %v569_v58 = vmul.f32 %v2732_v15, %v2732_v15  ;;  %v877_v10 = vmul.f32 %v2638_v14, %v3641_v33  ;;  %v3643_v38 = vld [vmem:[#allocation3_spill] sm:$0xff]  ;;  %v617_v18 = vmul.f32 %v2822_v29, %v2822_v29 }
  0xd2   : > { %1004 = vxpose.xlu1.b32.cont [10/12] (short) %v878_v35, 128  ;;  %v3640_v35 = vld [vmem:[#allocation14_spill] sm:$0xff] }
  0xd3   : > { %970 = vxpose.xlu0.b32.cont [8/12] (short) %v861_v26, 128  ;;  %v2756_v51 = vsub.f32 %v3640_v35, %v2670_v50  ;;  %v2764_v26 = vsub.f32 %v2459_v56, %v2700_v55  ;;  %v2778_v56 = vsub.f32 %v2487_v32, %v2700_v55  ;;  %v2792_v32 = vsub.f32 %v2513_v59, %v2700_v55 }
  0xd4   : > { %v618_v35 = vmul.f32 %v2784_v5, %v2784_v5 }
  0xd5   : > { %v602_v7 = vmul.f32 %v2756_v51, %v2756_v51  ;;  %v585_v28 = vmul.f32 %v2764_v26, %v2764_v26  ;;  %v593_v57 = vmul.f32 %v2778_v56, %v2778_v56  ;;  %v601_v33 = vmul.f32 %v2792_v32, %v2792_v32 }
  0xd6   : > { %1005 = vxpose.xlu1.b32.cont [11/12] (short) %v886_v41, 128  ;;  %v746_v41 = vadd.f32 %v745_v34, %v569_v58  ;;  %v2796_v34 = vpop.eup %1688 }
  0xd7   : > { %971 = vxpose.xlu0.b32.cont [9/12] (short) %v869_v11, 128  ;;  %v610_v11 = vmul.f32 %v2770_v43, %v2770_v43  ;;  %v767_v40 = vadd.f32 %v766_v24, %v602_v7  ;;  %v609_v24 = vmul.f32 %v2808_v31, %v2808_v31 }
  0xd8   : > { %v747_v25 = vadd.f32 %v746_v41, %v577_v6  ;;  %v3645_v41 = vld [vmem:[#allocation18_spill] sm:$0xff] }
  0xd9   : > { %v768_v22 = vadd.f32 %v767_v40, %v610_v11  ;;  %v816_v7 = vmul.f32 %v2796_v34, %v3645_v41  ;;  %v824_v11 = vmul.f32 %v2796_v34, %v3646_v30  ;;  %v2843_v40 = vsub.f32 %v2579_v54, %v2700_v55  ;;  %v3648_v41 = vld [vmem:[#allocation16_spill] sm:$0xff] }
  0xda   : > { %1006 = vxpose.xlu1.b32.end [12/12] (short) %v894_v60, 128  ;;  %v893_v60 = vmul.f32 %v2638_v14, %v3643_v38  ;;  %v748_v58 = vadd.f32 %v747_v25, %v585_v28  ;;  %v3644_v14 = vld [vmem:[#allocation7_spill] sm:$0xff]  ;;  %v2832_v28 = vpop.eup %1690  ;;  %v2837_v25 = vld [vmem:[%s3500_s1] ss:$0 sm:$0xff]  ;;  %v642_v38 = vmul.f32 %v2828_v17, %v2828_v17 }
  0xdb   : > { %972 = vxpose.xlu0.b32.cont [10/12] (short) %v877_v10, 128  ;;  %v808_v59 = vmul.f32 %v2796_v34, %v3644_v14  ;;  %v769_v6 = vadd.f32 %v768_v22, %v618_v35  ;;  %v807_v54 = vmul.f32 %v2832_v28, %v2465_v13  ;;  %v3647_v35 = vld [vmem:[#allocation9_spill] sm:$0xff]  ;;  %v2867_v14 = vsub.f32 %v2597_v52, %v2700_v55  ;;  %v3649_v52 = vld [vmem:[#allocation10_spill] sm:$0xff] }
  0xdc   : > { %v749_v10 = vadd.f32 %v748_v58, %v593_v57  ;;  %v832_v22 = vmul.f32 %v2796_v34, %v3647_v35 }
  0xdd   : > { %v770_v53 = vadd.f32 %v769_v6, %v626_v4 }
  0xde   : > { %v750_v2 = vadd.f32 %v749_v10, %v601_v33 }
  0xdf   : > { %973 = vxpose.xlu0.b32.cont [11/12] (short) %v885_v8, 128  ;;  %v634_v8 = vmul.f32 %v2814_v1, %v2814_v1 }
  0xe0   : > { %v751_v50 = vadd.f32 %v750_v2, %v609_v24  ;;  %v840_v24 = vmul.f32 %v2796_v34, %v3649_v52  ;;  %v2881_v2 = vsub.f32 %v2615_v9, %v2700_v55  ;;  %v848_v9 = vmul.f32 %v2796_v34, %v2502_v36 }
  0xe1   : > { %v831_v36 = vmul.f32 %v2832_v28, %v2517_v45 }
  0xe2   : > { %v752_v33 = vadd.f32 %v751_v50, %v617_v18  ;;  %v641_v55 = vmul.f32 %v2881_v2, %v2881_v2 }
  0xe3   : > { %974 = vxpose.xlu0.b32.end [12/12] (short) %v893_v60, 128  ;;  %v771_v60 = vadd.f32 %v770_v53, %v634_v8  ;;  %v633_v8 = vmul.f32 %v2867_v14, %v2867_v14 }
  0xe5   : > { %v772_v10 = vadd.f32 %v771_v60, %v642_v38  ;;  %v3650_v38 = vld [vmem:[#allocation12_spill] sm:$0xff] }
  0xe6   : > { %v823_v60 = vmul.f32 %v2832_v28, %v3650_v38 }
  0xeb   : > { %1059 = vxpose.xlu1.b32.start [1/12] (short) %v808_v59, 128  ;;  %v625_v59 = vmul.f32 %v2843_v40, %v2843_v40 }
  0xed   : > { %v753_v53 = vadd.f32 %v752_v33, %v625_v59 }
  0xef   : > { %1060 = vxpose.xlu1.b32.cont [2/12] (short) %v816_v7, 128  ;;  %v815_v7 = vmul.f32 %v2832_v28, %v3648_v41 }
  0xf1   : > { %v947_v57 = vpop.trf.xlu1 }
  0xf2   : > { %v1179_v58 = vmul.f32 %v2837_v25, %v947_v57  ;;  %v754_v57 = vadd.f32 %v753_v53, %v633_v8  ;;  %v3651_v53 = vld [vmem:[#allocation13_spill] sm:$0xff] }
  0xf3   : > { %1061 = vxpose.xlu1.b32.cont [3/12] (short) %v824_v11, 128  ;;  %v773_v11 = vrot.slane %v772_v10, 4 }
  0xf4   : > { %v1313_v13 = vadd.f32 %v2853_v47, %v1179_v58  ;;  %1027 = vxpose.xlu0.b32.start [1/12] (short) %v807_v54, 128 }
  0xf5   : > { %v948_v4 = vpop.trf.xlu1  ;;  %v774_v35 = vadd.f32 %v773_v11, %v772_v10 }
  0xf6   : > { %1442 = vst.msk [vmem:[%s2861_s27 + $0x80] sm:$0xff] %vm1425_vm0, %v1313_v13  ;;  %v1180_v6 = vmul.f32 %v2837_v25, %v948_v4  ;;  %v856_v4 = vmul.f32 %v2796_v34, %v2526_v0  ;;  %v839_v0 = vmul.f32 %v2832_v28, %v2539_v16 }
  0xf7   : > { %1062 = vxpose.xlu1.b32.cont [4/12] (short) %v832_v22, 128 }
  0xf8   : > { %v1314_v30 = vadd.f32 %v2853_v47, %v1180_v6  ;;  %1028 = vxpose.xlu0.b32.cont [2/12] (short) %v815_v7, 128  ;;  %v755_v6 = vadd.f32 %v754_v57, %v641_v55  ;;  %v775_v7 = vrot.slane %v774_v35, 2  ;;  %v847_v55 = vmul.f32 %v2832_v28, %v2561_v44 }
  0xf9   : > { %v949_v18 = vpop.trf.xlu1 }
  0xfa   : > { %1443 = vst.msk [vmem:[%s2861_s27 + $0x88] sm:$0xff] %vm1425_vm0, %v1314_v30  ;;  %v1181_v50 = vmul.f32 %v2837_v25, %v949_v18  ;;  %v915_v58 = vpop.trf.xlu0  ;;  %v864_v30 = vmul.f32 %v2796_v34, %v3651_v53  ;;  %v756_v11 = vrot.slane %v755_v6, 4  ;;  %v776_v38 = vadd.f32 %v775_v7, %v774_v35 }
  0xfb   : > { %1063 = vxpose.xlu1.b32.cont [5/12] (short) %v840_v24, 128  ;;  %v1163_v22 = vmul.f32 %v2837_v25, %v915_v58  ;;  %v3652_v58 = vld [vmem:[#allocation15_spill] sm:$0xff] }
  0xfc   : > { %v1315_v54 = vadd.f32 %v2853_v47, %v1181_v50  ;;  %1029 = vxpose.xlu0.b32.cont [3/12] (short) %v823_v60, 128  ;;  %v757_v35 = vadd.f32 %v756_v11, %v755_v6  ;;  %v3654_v11 = vld [vmem:[#allocation19_spill] sm:$0xff] }
  0xfd   : > { %v950_v59 = vpop.trf.xlu1  ;;  %v1297_v13 = vadd.f32 %v2853_v47, %v1163_v22 }
  0xfe   : > { %1444 = vst.msk [vmem:[%s2861_s27 + $0x90] sm:$0xff] %vm1425_vm0, %v1315_v54  ;;  %v1182_v33 = vmul.f32 %v2837_v25, %v950_v59  ;;  %v916_v10 = vpop.trf.xlu0  ;;  %v872_v54 = vmul.f32 %v2796_v34, %v3652_v58  ;;  %v758_v7 = vrot.slane %v757_v35, 2 }
  0xff   : > { %1064 = vxpose.xlu1.b32.cont [6/12] (short) %v848_v9, 128  ;;  %1426 = vst.msk [vmem:[%s2861_s27] sm:$0xff] %vm1425_vm0, %v1297_v13  ;;  %v1164_v52 = vmul.f32 %v2837_v25, %v916_v10 }
 0x100   : > { %v1316_v41 = vadd.f32 %v2853_v47, %v1182_v33  ;;  %1030 = vxpose.xlu0.b32.cont [4/12] (short) %v831_v36, 128  ;;  %v777_v33 = vrot.slane %v776_v38, 1 }
 0x101   : > { %v951_v24 = vpop.trf.xlu1  ;;  %v1298_v8 = vadd.f32 %v2853_v47, %v1164_v52 }
 0x102   : > { %1445 = vst.msk [vmem:[%s2861_s27 + $0x98] sm:$0xff] %vm1425_vm0, %v1316_v41  ;;  %v1183_v45 = vmul.f32 %v2837_v25, %v951_v24  ;;  %v917_v18 = vpop.trf.xlu0  ;;  %v880_v41 = vmul.f32 %v2796_v34, %v2589_v37  ;;  %v863_v37 = vmul.f32 %v2832_v28, %v2601_v27 }
 0x103   : > { %1065 = vxpose.xlu1.b32.cont [7/12] (short) %v856_v4, 128  ;;  %1427 = vst.msk [vmem:[%s2861_s27 + $0x8] sm:$0xff] %vm1425_vm0, %v1298_v8  ;;  %v1165_v60 = vmul.f32 %v2837_v25, %v917_v18  ;;  %v3653_v4 = vld [vmem:[#allocation17_spill] sm:$0xff]  ;;  %v888_v18 = vmul.f32 %v2796_v34, %v3654_v11 }
 0x104   : > { %v1317_v50 = vadd.f32 %v2853_v47, %v1183_v45  ;;  %1031 = vxpose.xlu0.b32.cont [5/12] (short) %v839_v0, 128  ;;  %v855_v10 = vmul.f32 %v2832_v28, %v3653_v4  ;;  %v778_v45 = vadd.f32 %v777_v33, %v776_v38 }
 0x105   : > { %v952_v9 = vpop.trf.xlu1  ;;  %v1299_v57 = vadd.f32 %v2853_v47, %v1165_v60 }
 0x106   : > { %1446 = vst.msk [vmem:[%s2861_s27 + $0xa0] sm:$0xff] %vm1425_vm0, %v1317_v50  ;;  %v1184_v16 = vmul.f32 %v2837_v25, %v952_v9  ;;  %v918_v22 = vpop.trf.xlu0  ;;  %v759_v50 = vadd.f32 %v758_v7, %v757_v35  ;;  %v786_v9 = vmul.f32 0.010416667, %v778_v45 }
 0x107   : > { %1066 = vxpose.xlu1.b32.cont [8/12] (short) %v864_v30, 128  ;;  %1428 = vst.msk [vmem:[%s2861_s27 + $0x10] sm:$0xff] %vm1425_vm0, %v1299_v57  ;;  %v1166_v36 = vmul.f32 %v2837_v25, %v918_v22  ;;  %v871_v57 = vmul.f32 %v2832_v28, %v2619_v19 }
 0x108   : > { %v1318_v59 = vadd.f32 %v2853_v47, %v1184_v16  ;;  %1032 = vxpose.xlu0.b32.cont [6/12] (short) %v847_v55, 128  ;;  %v760_v22 = vrot.slane %v759_v50, 1 }
 0x109   : > { %v953_v13 = vpop.trf.xlu1  ;;  %v1300_v6 = vadd.f32 %v2853_v47, %v1166_v36  ;;  %v794_v36 = vadd.f32 1e-05, %v786_v9 }
 0x10a   : > { %1447 = vst.msk [vmem:[%s2861_s27 + $0xa8] sm:$0xff] %vm1425_vm0, %v1318_v59  ;;  %v1185_v44 = vmul.f32 %v2837_v25, %v953_v13  ;;  %v919_v52 = vpop.trf.xlu0 }
 0x10b   : > { %1067 = vxpose.xlu1.b32.cont [9/12] (short) %v872_v54, 128  ;;  %1429 = vst.msk [vmem:[%s2861_s27 + $0x18] sm:$0xff] %vm1425_vm0, %v1300_v6  ;;  %v1167_v0 = vmul.f32 %v2837_v25, %v919_v52  ;;  %v3655_v54 = vld [vmem:[#allocation25_spill] sm:$0xff]  ;;  %1692 = vrsqrt.f32 %v794_v36 }
 0x10c   : > { %v1319_v24 = vadd.f32 %v2853_v47, %v1185_v44  ;;  %1033 = vxpose.xlu0.b32.cont [7/12] (short) %v855_v10, 128  ;;  %v896_v35 = vmul.f32 %v2796_v34, %v3655_v54  ;;  %v879_v34 = vmul.f32 %v2832_v28, %v2634_v61  ;;  %v761_v10 = vadd.f32 %v760_v22, %v759_v50 }
 0x10d   : > { %v954_v8 = vpop.trf.xlu1  ;;  %v1301_v30 = vadd.f32 %v2853_v47, %v1167_v0 }
 0x10e   : > { %1448 = vst.msk [vmem:[%s2861_s27 + $0xb0] sm:$0xff] %vm1425_vm0, %v1319_v24  ;;  %v1186_v53 = vmul.f32 %v2837_v25, %v954_v8  ;;  %v920_v38 = vpop.trf.xlu0  ;;  %v887_v24 = vmul.f32 %v2832_v28, %v2648_v63  ;;  %v785_v0 = vmul.f32 0.010416667, %v761_v10  ;;  %v895_v63 = vmul.f32 %v2832_v28, %v2658_v46 }
 0x10f   : > { %1068 = vxpose.xlu1.b32.cont [10/12] (short) %v880_v41, 128  ;;  %1430 = vst.msk [vmem:[%s2861_s27 + $0x20] sm:$0xff] %vm1425_vm0, %v1301_v30  ;;  %v1168_v16 = vmul.f32 %v2837_v25, %v920_v38 }
 0x110   : > { %v1320_v60 = vadd.f32 %v2853_v47, %v1186_v53  ;;  %1034 = vxpose.xlu0.b32.cont [8/12] (short) %v863_v37, 128  ;;  %v793_v50 = vadd.f32 1e-05, %v785_v0 }
 0x111   : > { %v955_v55 = vpop.trf.xlu1  ;;  %v1302_v58 = vadd.f32 %v2853_v47, %v1168_v16 }
 0x112   : > { %1449 = vst.msk [vmem:[%s2861_s27 + $0xb8] sm:$0xff] %vm1425_vm0, %v1320_v60  ;;  %v1187_v27 = vmul.f32 %v2837_v25, %v955_v55  ;;  %v921_v59 = vpop.trf.xlu0  ;;  %1694 = vrsqrt.f32 %v793_v50 }
 0x113   : > { %1069 = vxpose.xlu1.b32.cont [11/12] (short) %v888_v18, 128  ;;  %1431 = vst.msk [vmem:[%s2861_s27 + $0x28] sm:$0xff] %vm1425_vm0, %v1302_v58  ;;  %v1169_v13 = vmul.f32 %v2837_v25, %v921_v59 }
 0x114   : > { %v1321_v33 = vadd.f32 %v2853_v47, %v1187_v27  ;;  %1035 = vxpose.xlu0.b32.cont [9/12] (short) %v871_v57, 128 }
 0x115   : > { %v956_v44 = vpop.trf.xlu1  ;;  %v1303_v4 = vadd.f32 %v2853_v47, %v1169_v13  ;;  %v2999_v55 = vpop.eup %1692 }
 0x116   : > { %1450 = vst.msk [vmem:[%s2861_s27 + $0xc0] sm:$0xff] %vm1425_vm0, %v1321_v33  ;;  %v1188_v19 = vmul.f32 %v2837_v25, %v956_v44  ;;  %v922_v6 = vpop.trf.xlu0  ;;  %v842_v50 = vmul.f32 %v2999_v55, %v2722_v3 }
 0x117   : > { %1070 = vxpose.xlu1.b32.end [12/12] (short) %v896_v35, 128  ;;  %1432 = vst.msk [vmem:[%s2861_s27 + $0x30] sm:$0xff] %vm1425_vm0, %v1303_v4  ;;  %v1170_v7 = vmul.f32 %v2837_v25, %v922_v6  ;;  %v810_v35 = vmul.f32 %v2999_v55, %v2678_v49  ;;  %v818_v49 = vmul.f32 %v2999_v55, %v2682_v48 }
 0x118   : > { %v1322_v41 = vadd.f32 %v2853_v47, %v1188_v19  ;;  %1036 = vxpose.xlu0.b32.cont [10/12] (short) %v879_v34, 128  ;;  %v826_v48 = vmul.f32 %v2999_v55, %v2690_v20  ;;  %v834_v20 = vmul.f32 %v2999_v55, %v2704_v12 }
 0x119   : > { %v957_v52 = vpop.trf.xlu1  ;;  %v1304_v45 = vadd.f32 %v2853_v47, %v1170_v7 }
 0x11a   : > { %1451 = vst.msk [vmem:[%s2861_s27 + $0xc8] sm:$0xff] %vm1425_vm0, %v1322_v41  ;;  %v1189_v61 = vmul.f32 %v2837_v25, %v957_v52  ;;  %v923_v8 = vpop.trf.xlu0 }
 0x11b   : > { %1433 = vst.msk [vmem:[%s2861_s27 + $0x38] sm:$0xff] %vm1425_vm0, %v1304_v45  ;;  %v1171_v37 = vmul.f32 %v2837_v25, %v923_v8 }
 0x11c   : > { %v1323_v53 = vadd.f32 %v2853_v47, %v1189_v61  ;;  %1037 = vxpose.xlu0.b32.cont [11/12] (short) %v887_v24, 128  ;;  %v3026_v6 = vpop.eup %1694 }
 0x11d   : > { %v958_v30 = vpop.trf.xlu1  ;;  %v1305_v18 = vadd.f32 %v2853_v47, %v1171_v37  ;;  %v809_v0 = vmul.f32 %v3026_v6, %v2714_v62 }
 0x11e   : > { %1452 = vst.msk [vmem:[%s2861_s27 + $0xd0] sm:$0xff] %vm1425_vm0, %v1323_v53  ;;  %v1190_v11 = vmul.f32 %v2837_v25, %v958_v30  ;;  %v924_v38 = vpop.trf.xlu0 }
 0x11f   : > { %1434 = vst.msk [vmem:[%s2861_s27 + $0x40] sm:$0xff] %vm1425_vm0, %v1305_v18  ;;  %v1172_v9 = vmul.f32 %v2837_v25, %v924_v38 }
 0x120   : > { %v1324_v60 = vadd.f32 %v2853_v47, %v1190_v11  ;;  %1038 = vxpose.xlu0.b32.end [12/12] (short) %v895_v63, 128  ;;  %v817_v63 = vmul.f32 %v3026_v6, %v2718_v23 }
 0x121   : > { %v959_v16 = vpop.trf.xlu1  ;;  %v1306_v28 = vadd.f32 %v2853_v47, %v1172_v9 }
 0x122   : > { %1453 = vst.msk [vmem:[%s2861_s27 + $0xd8] sm:$0xff] %vm1425_vm0, %v1324_v60  ;;  %v1191_v46 = vmul.f32 %v2837_v25, %v959_v16  ;;  %v925_v27 = vpop.trf.xlu0  ;;  %v825_v16 = vmul.f32 %v3026_v6, %v2732_v15 }
 0x123   : > { %1435 = vst.msk [vmem:[%s2861_s27 + $0x48] sm:$0xff] %vm1425_vm0, %v1306_v28  ;;  %v1173_v58 = vmul.f32 %v2837_v25, %v925_v27  ;;  %v850_v28 = vmul.f32 %v2999_v55, %v2740_v39 }
 0x124   : > { %v1325_v57 = vadd.f32 %v2853_v47, %v1191_v46 }
 0x125   : > { %v960_v54 = vpop.trf.xlu1  ;;  %v1307_v59 = vadd.f32 %v2853_v47, %v1173_v58 }
 0x126   : > { %1454 = vst.msk [vmem:[%s2861_s27 + $0xe0] sm:$0xff] %vm1425_vm0, %v1325_v57  ;;  %v1192_v22 = vmul.f32 %v2837_v25, %v960_v54  ;;  %v926_v33 = vpop.trf.xlu0  ;;  %v833_v54 = vmul.f32 %v3026_v6, %v2750_v42 }
 0x127   : > { %1436 = vst.msk [vmem:[%s2861_s27 + $0x50] sm:$0xff] %vm1425_vm0, %v1307_v59  ;;  %v1174_v13 = vmul.f32 %v2837_v25, %v926_v33 }
 0x128   : > { %v1326_v36 = vadd.f32 %v2853_v47, %v1192_v22  ;;  %v858_v22 = vmul.f32 %v2999_v55, %v2756_v51 }
 0x129   : > { %v961_v44 = vpop.trf.xlu1  ;;  %1123 = vxpose.xlu1.b32.start [1/12] (short) %v810_v35, 128  ;;  %v1308_v34 = vadd.f32 %v2853_v47, %v1174_v13  ;;  %v841_v13 = vmul.f32 %v3026_v6, %v2764_v26 }
 0x12a   : > { %1455 = vst.msk [vmem:[%s2861_s27 + $0xe8] sm:$0xff] %vm1425_vm0, %v1326_v36  ;;  %v1193_v19 = vmul.f32 %v2837_v25, %v961_v44  ;;  %v927_v4 = vpop.trf.xlu0 }
 0x12b   : > { %1437 = vst.msk [vmem:[%s2861_s27 + $0x58] sm:$0xff] %vm1425_vm0, %v1308_v34  ;;  %v1175_v41 = vmul.f32 %v2837_v25, %v927_v4 }
 0x12c   : > { %v1327_v10 = vadd.f32 %v2853_v47, %v1193_v19 }
 0x12d   : > { %v962_v7 = vpop.trf.xlu1  ;;  %1124 = vxpose.xlu1.b32.cont [2/12] (short) %v818_v49, 128  ;;  %v1309_v61 = vadd.f32 %v2853_v47, %v1175_v41  ;;  %v866_v49 = vmul.f32 %v2999_v55, %v2770_v43 }
 0x12e   : > { %1456 = vst.msk [vmem:[%s2861_s27 + $0xf0] sm:$0xff] %vm1425_vm0, %v1327_v10  ;;  %v1194_v52 = vmul.f32 %v2837_v25, %v962_v7  ;;  %v928_v24 = vpop.trf.xlu0  ;;  %v849_v10 = vmul.f32 %v3026_v6, %v2778_v56  ;;  %v874_v7 = vmul.f32 %v2999_v55, %v2784_v5 }
 0x12f   : > { %1438 = vst.msk [vmem:[%s2861_s27 + $0x60] sm:$0xff] %vm1425_vm0, %v1309_v61  ;;  %v1176_v8 = vmul.f32 %v2837_v25, %v928_v24  ;;  %v857_v24 = vmul.f32 %v3026_v6, %v2792_v32 }
 0x130   : > { %v1328_v45 = vadd.f32 %v2853_v47, %v1194_v52 }
 0x131   : > { %v1011_v53 = vpop.trf.xlu1  ;;  %1125 = vxpose.xlu1.b32.cont [3/12] (short) %v826_v48, 128  ;;  %v1310_v30 = vadd.f32 %v2853_v47, %v1176_v8 }
 0x132   : > { %1457 = vst.msk [vmem:[%s2861_s27 + $0xf8] sm:$0xff] %vm1425_vm0, %v1328_v45  ;;  %v1211_v37 = vmul.f32 %v2837_v25, %v1011_v53  ;;  %v929_v11 = vpop.trf.xlu0  ;;  %1091 = vxpose.xlu0.b32.start [1/12] (short) %v809_v0, 128  ;;  %v882_v0 = vmul.f32 %v2999_v55, %v2800_v21 }
 0x133   : > { %1439 = vst.msk [vmem:[%s2861_s27 + $0x68] sm:$0xff] %vm1425_vm0, %v1310_v30  ;;  %v1177_v18 = vmul.f32 %v2837_v25, %v929_v11  ;;  %v890_v11 = vmul.f32 %v2999_v55, %v2814_v1 }
 0x134   : > { %v1345_v62 = vadd.f32 %v2853_v47, %v1211_v37  ;;  %v865_v37 = vmul.f32 %v3026_v6, %v2808_v31 }
 0x135   : > { %v1012_v12 = vpop.trf.xlu1  ;;  %1126 = vxpose.xlu1.b32.cont [4/12] (short) %v834_v20, 128  ;;  %v1311_v60 = vadd.f32 %v2853_v47, %v1177_v18 }
 0x136   : > { %1474 = vst.msk [vmem:[%s2861_s27 + $0x180] sm:$0xff] %vm1425_vm0, %v1345_v62  ;;  %v1212_v38 = vmul.f32 %v2837_v25, %v1012_v12  ;;  %v930_v9 = vpop.trf.xlu0  ;;  %1092 = vxpose.xlu0.b32.cont [2/12] (short) %v817_v63, 128  ;;  %v873_v12 = vmul.f32 %v3026_v6, %v2822_v29 }
 0x137   : > { %1440 = vst.msk [vmem:[%s2861_s27 + $0x70] sm:$0xff] %vm1425_vm0, %v1311_v60  ;;  %v1178_v46 = vmul.f32 %v2837_v25, %v930_v9 }
 0x138   : > { %v1346_v23 = vadd.f32 %v2853_v47, %v1212_v38  ;;  %v898_v38 = vmul.f32 %v2999_v55, %v2828_v17 }
 0x139   : > { %v1013_v3 = vpop.trf.xlu1  ;;  %1127 = vxpose.xlu1.b32.cont [5/12] (short) %v842_v50, 128  ;;  %v1312_v57 = vadd.f32 %v2853_v47, %v1178_v46 }
 0x13a   : > { %1475 = vst.msk [vmem:[%s2861_s27 + $0x188] sm:$0xff] %vm1425_vm0, %v1346_v23  ;;  %v1213_v27 = vmul.f32 %v2837_v25, %v1013_v3  ;;  %v979_v58 = vpop.trf.xlu0  ;;  %1093 = vxpose.xlu0.b32.cont [3/12] (short) %v825_v16, 128  ;;  %v881_v16 = vmul.f32 %v3026_v6, %v2843_v40  ;;  %v889_v40 = vmul.f32 %v3026_v6, %v2867_v14 }
 0x13b   : > { %1441 = vst.msk [vmem:[%s2861_s27 + $0x78] sm:$0xff] %vm1425_vm0, %v1312_v57  ;;  %v1195_v35 = vmul.f32 %v2837_v25, %v979_v58  ;;  %v897_v14 = vmul.f32 %v3026_v6, %v2881_v2 }
 0x13c   : > { %v1347_v15 = vadd.f32 %v2853_v47, %v1213_v27 }
 0x13d   : > { %v1014_v39 = vpop.trf.xlu1  ;;  %1128 = vxpose.xlu1.b32.cont [6/12] (short) %v850_v28, 128  ;;  %v1329_v33 = vadd.f32 %v2853_v47, %v1195_v35 }
 0x13e   : > { %1476 = vst.msk [vmem:[%s2861_s27 + $0x190] sm:$0xff] %vm1425_vm0, %v1347_v15  ;;  %v1214_v59 = vmul.f32 %v2837_v25, %v1014_v39  ;;  %v980_v36 = vpop.trf.xlu0  ;;  %1094 = vxpose.xlu0.b32.cont [4/12] (short) %v833_v54, 128 }
 0x13f   : > { %1458 = vst.msk [vmem:[%s2861_s27 + $0x100] sm:$0xff] %vm1425_vm0, %v1329_v33  ;;  %v1196_v44 = vmul.f32 %v2837_v25, %v980_v36 }
 0x140   : > { %v1348_v42 = vadd.f32 %v2853_v47, %v1214_v59 }
 0x141   : > { %v1015_v51 = vpop.trf.xlu1  ;;  %1129 = vxpose.xlu1.b32.cont [7/12] (short) %v858_v22, 128  ;;  %v1330_v34 = vadd.f32 %v2853_v47, %v1196_v44 }
 0x142   : > { %1477 = vst.msk [vmem:[%s2861_s27 + $0x198] sm:$0xff] %vm1425_vm0, %v1348_v42  ;;  %v1215_v19 = vmul.f32 %v2837_v25, %v1015_v51  ;;  %v981_v4 = vpop.trf.xlu0  ;;  %1095 = vxpose.xlu0.b32.cont [5/12] (short) %v841_v13, 128 }
 0x143   : > { %1459 = vst.msk [vmem:[%s2861_s27 + $0x108] sm:$0xff] %vm1425_vm0, %v1330_v34  ;;  %v1197_v41 = vmul.f32 %v2837_v25, %v981_v4 }
 0x144   : > { %v1349_v26 = vadd.f32 %v2853_v47, %v1215_v19 }
 0x145   : > { %v1016_v43 = vpop.trf.xlu1  ;;  %1130 = vxpose.xlu1.b32.cont [8/12] (short) %v866_v49, 128  ;;  %v1331_v52 = vadd.f32 %v2853_v47, %v1197_v41 }
 0x146   : > { %1478 = vst.msk [vmem:[%s2861_s27 + $0x1a0] sm:$0xff] %vm1425_vm0, %v1349_v26  ;;  %v1216_v48 = vmul.f32 %v2837_v25, %v1016_v43  ;;  %v982_v61 = vpop.trf.xlu0  ;;  %1096 = vxpose.xlu0.b32.cont [6/12] (short) %v849_v10, 128 }
 0x147   : > { %1460 = vst.msk [vmem:[%s2861_s27 + $0x110] sm:$0xff] %vm1425_vm0, %v1331_v52  ;;  %v1198_v45 = vmul.f32 %v2837_v25, %v982_v61 }
 0x148   : > { %v1350_v56 = vadd.f32 %v2853_v47, %v1216_v48 }
 0x149   : > { %v1017_v5 = vpop.trf.xlu1  ;;  %1131 = vxpose.xlu1.b32.cont [9/12] (short) %v874_v7, 128  ;;  %v1332_v53 = vadd.f32 %v2853_v47, %v1198_v45 }
 0x14a   : > { %1479 = vst.msk [vmem:[%s2861_s27 + $0x1a8] sm:$0xff] %vm1425_vm0, %v1350_v56  ;;  %v1217_v8 = vmul.f32 %v2837_v25, %v1017_v5  ;;  %v983_v20 = vpop.trf.xlu0  ;;  %1097 = vxpose.xlu0.b32.cont [7/12] (short) %v857_v24, 128 }
 0x14b   : > { %1461 = vst.msk [vmem:[%s2861_s27 + $0x118] sm:$0xff] %vm1425_vm0, %v1332_v53  ;;  %v1199_v30 = vmul.f32 %v2837_v25, %v983_v20 }
 0x14c   : > { %v1351_v32 = vadd.f32 %v2853_v47, %v1217_v8 }
 0x14d   : > { %v1018_v21 = vpop.trf.xlu1  ;;  %1132 = vxpose.xlu1.b32.cont [10/12] (short) %v882_v0, 128  ;;  %v1333_v63 = vadd.f32 %v2853_v47, %v1199_v30 }
 0x14e   : > { %1480 = vst.msk [vmem:[%s2861_s27 + $0x1b0] sm:$0xff] %vm1425_vm0, %v1351_v32  ;;  %v1218_v62 = vmul.f32 %v2837_v25, %v1018_v21  ;;  %v984_v18 = vpop.trf.xlu0  ;;  %1098 = vxpose.xlu0.b32.cont [8/12] (short) %v865_v37, 128 }
 0x14f   : > { %1462 = vst.msk [vmem:[%s2861_s27 + $0x120] sm:$0xff] %vm1425_vm0, %v1333_v63  ;;  %v1200_v50 = vmul.f32 %v2837_v25, %v984_v18 }
 0x150   : > { %v1352_v31 = vadd.f32 %v2853_v47, %v1218_v62 }
 0x151   : > { %v1019_v1 = vpop.trf.xlu1  ;;  %1133 = vxpose.xlu1.b32.cont [11/12] (short) %v890_v11, 128  ;;  %v1334_v9 = vadd.f32 %v2853_v47, %v1200_v50 }
 0x152   : > { %1481 = vst.msk [vmem:[%s2861_s27 + $0x1b8] sm:$0xff] %vm1425_vm0, %v1352_v31  ;;  %v1219_v60 = vmul.f32 %v2837_v25, %v1019_v1  ;;  %v985_v23 = vpop.trf.xlu0  ;;  %1099 = vxpose.xlu0.b32.cont [9/12] (short) %v873_v12, 128 }
 0x153   : > { %1463 = vst.msk [vmem:[%s2861_s27 + $0x128] sm:$0xff] %vm1425_vm0, %v1334_v9  ;;  %v1201_v46 = vmul.f32 %v2837_v25, %v985_v23 }
 0x154   : > { %v1353_v29 = vadd.f32 %v2853_v47, %v1219_v60 }
 0x155   : > { %v1020_v17 = vpop.trf.xlu1  ;;  %1134 = vxpose.xlu1.b32.end [12/12] (short) %v898_v38, 128  ;;  %v1335_v3 = vadd.f32 %v2853_v47, %v1201_v46 }
 0x156   : > { %1482 = vst.msk [vmem:[%s2861_s27 + $0x1c0] sm:$0xff] %vm1425_vm0, %v1353_v29  ;;  %v1220_v55 = vmul.f32 %v2837_v25, %v1020_v17  ;;  %v986_v28 = vpop.trf.xlu0  ;;  %1100 = vxpose.xlu0.b32.cont [10/12] (short) %v881_v16, 128 }
 0x157   : > { %1464 = vst.msk [vmem:[%s2861_s27 + $0x130] sm:$0xff] %vm1425_vm0, %v1335_v3  ;;  %v1202_v57 = vmul.f32 %v2837_v25, %v986_v28 }
 0x158   : > { %v1354_v27 = vadd.f32 %v2853_v47, %v1220_v55 }
 0x159   : > { %v1021_v58 = vpop.trf.xlu1  ;;  %v1336_v54 = vadd.f32 %v2853_v47, %v1202_v57 }
 0x15a   : > { %1483 = vst.msk [vmem:[%s2861_s27 + $0x1c8] sm:$0xff] %vm1425_vm0, %v1354_v27  ;;  %v1221_v15 = vmul.f32 %v2837_v25, %v1021_v58  ;;  %v987_v35 = vpop.trf.xlu0  ;;  %1101 = vxpose.xlu0.b32.cont [11/12] (short) %v889_v40, 128 }
 0x15b   : > { %1465 = vst.msk [vmem:[%s2861_s27 + $0x138] sm:$0xff] %vm1425_vm0, %v1336_v54  ;;  %v1203_v22 = vmul.f32 %v2837_v25, %v987_v35 }
 0x15c   : > { %v1355_v39 = vadd.f32 %v2853_v47, %v1221_v15 }
 0x15d   : > { %v1022_v59 = vpop.trf.xlu1  ;;  %v1337_v36 = vadd.f32 %v2853_v47, %v1203_v22 }
 0x15e   : > { %1484 = vst.msk [vmem:[%s2861_s27 + $0x1d0] sm:$0xff] %vm1425_vm0, %v1355_v39  ;;  %v1222_v33 = vmul.f32 %v2837_v25, %v1022_v59  ;;  %v988_v42 = vpop.trf.xlu0  ;;  %1102 = vxpose.xlu0.b32.end [12/12] (short) %v897_v14, 128 }
 0x15f   : > { %1466 = vst.msk [vmem:[%s2861_s27 + $0x140] sm:$0xff] %vm1425_vm0, %v1337_v36  ;;  %v1204_v2 = vmul.f32 %v2837_v25, %v988_v42 }
 0x160   : > { %v1356_v13 = vadd.f32 %v2853_v47, %v1222_v33 }
 0x161   : > { %v1023_v6 = vpop.trf.xlu1  ;;  %v1338_v51 = vadd.f32 %v2853_v47, %v1204_v2 }
 0x162   : > { %1485 = vst.msk [vmem:[%s2861_s27 + $0x1d8] sm:$0xff] %vm1425_vm0, %v1356_v13  ;;  %v1223_v44 = vmul.f32 %v2837_v25, %v1023_v6  ;;  %v989_v49 = vpop.trf.xlu0 }
 0x163   : > { %1467 = vst.msk [vmem:[%s2861_s27 + $0x148] sm:$0xff] %vm1425_vm0, %v1338_v51  ;;  %v1205_v34 = vmul.f32 %v2837_v25, %v989_v49 }
 0x164   : > { %v1357_v19 = vadd.f32 %v2853_v47, %v1223_v44 }
 0x165   : > { %v1024_v4 = vpop.trf.xlu1  ;;  %v1339_v10 = vadd.f32 %v2853_v47, %v1205_v34 }
 0x166   : > { %1486 = vst.msk [vmem:[%s2861_s27 + $0x1e0] sm:$0xff] %vm1425_vm0, %v1357_v19  ;;  %v1224_v26 = vmul.f32 %v2837_v25, %v1024_v4  ;;  %v990_v41 = vpop.trf.xlu0 }
 0x167   : > { %1468 = vst.msk [vmem:[%s2861_s27 + $0x150] sm:$0xff] %vm1425_vm0, %v1339_v10  ;;  %v1206_v7 = vmul.f32 %v2837_v25, %v990_v41 }
 0x168   : > { %v1358_v43 = vadd.f32 %v2853_v47, %v1224_v26 }
 0x169   : > { %v1025_v48 = vpop.trf.xlu1  ;;  %v1340_v61 = vadd.f32 %v2853_v47, %v1206_v7 }
 0x16a   : > { %1487 = vst.msk [vmem:[%s2861_s27 + $0x1e8] sm:$0xff] %vm1425_vm0, %v1358_v43  ;;  %v1225_v52 = vmul.f32 %v2837_v25, %v1025_v48  ;;  %v991_v56 = vpop.trf.xlu0 }
 0x16b   : > { %1469 = vst.msk [vmem:[%s2861_s27 + $0x158] sm:$0xff] %vm1425_vm0, %v1340_v61  ;;  %v1207_v45 = vmul.f32 %v2837_v25, %v991_v56 }
 0x16c   : > { %v1359_v24 = vadd.f32 %v2853_v47, %v1225_v52 }
 0x16d   : > { %v1026_v5 = vpop.trf.xlu1  ;;  %v1341_v8 = vadd.f32 %v2853_v47, %v1207_v45 }
 0x16e   : > { %1488 = vst.msk [vmem:[%s2861_s27 + $0x1f0] sm:$0xff] %vm1425_vm0, %v1359_v24  ;;  %v1226_v0 = vmul.f32 %v2837_v25, %v1026_v5  ;;  %v992_v53 = vpop.trf.xlu0 }
 0x16f   : > { %1470 = vst.msk [vmem:[%s2861_s27 + $0x160] sm:$0xff] %vm1425_vm0, %v1341_v8  ;;  %v1208_v32 = vmul.f32 %v2837_v25, %v992_v53 }
 0x170   : > { %v1360_v20 = vadd.f32 %v2853_v47, %v1226_v0 }
 0x171   : > { %v1075_v37 = vpop.trf.xlu1  ;;  %v1342_v21 = vadd.f32 %v2853_v47, %v1208_v32 }
 0x172   : > { %1489 = vst.msk [vmem:[%s2861_s27 + $0x1f8] sm:$0xff] %vm1425_vm0, %v1360_v20  ;;  %v1243_v30 = vmul.f32 %v2837_v25, %v1075_v37  ;;  %v993_v11 = vpop.trf.xlu0 }
 0x173   : > { %1471 = vst.msk [vmem:[%s2861_s27 + $0x168] sm:$0xff] %vm1425_vm0, %v1342_v21  ;;  %v1209_v63 = vmul.f32 %v2837_v25, %v993_v11 }
 0x174   : > { %v1377_v62 = vadd.f32 %v2853_v47, %v1243_v30 }
 0x175   : > { %v1076_v18 = vpop.trf.xlu1  ;;  %v1343_v12 = vadd.f32 %v2853_v47, %v1209_v63 }
 0x176   : > { %1506 = vst.msk [vmem:[%s2861_s27 + $0x280] sm:$0xff] %vm1425_vm0, %v1377_v62  ;;  %v1244_v31 = vmul.f32 %v2837_v25, %v1076_v18  ;;  %v994_v50 = vpop.trf.xlu0 }
 0x177   : > { %1472 = vst.msk [vmem:[%s2861_s27 + $0x170] sm:$0xff] %vm1425_vm0, %v1343_v12  ;;  %v1210_v38 = vmul.f32 %v2837_v25, %v994_v50 }
 0x178   : > { %v1378_v1 = vadd.f32 %v2853_v47, %v1244_v31 }
 0x179   : > { %v1077_v60 = vpop.trf.xlu1  ;;  %v1344_v23 = vadd.f32 %v2853_v47, %v1210_v38 }
 0x17a   : > { %1507 = vst.msk [vmem:[%s2861_s27 + $0x288] sm:$0xff] %vm1425_vm0, %v1378_v1  ;;  %v1245_v9 = vmul.f32 %v2837_v25, %v1077_v60  ;;  %v1043_v29 = vpop.trf.xlu0 }
 0x17b   : > { %1473 = vst.msk [vmem:[%s2861_s27 + $0x178] sm:$0xff] %vm1425_vm0, %v1344_v23  ;;  %v1227_v46 = vmul.f32 %v2837_v25, %v1043_v29 }
 0x17c   : > { %v1379_v16 = vadd.f32 %v2853_v47, %v1245_v9 }
 0x17d   : > { %v1078_v17 = vpop.trf.xlu1  ;;  %v1361_v3 = vadd.f32 %v2853_v47, %v1227_v46 }
 0x17e   : > { %1508 = vst.msk [vmem:[%s2861_s27 + $0x290] sm:$0xff] %vm1425_vm0, %v1379_v16  ;;  %v1246_v55 = vmul.f32 %v2837_v25, %v1078_v17  ;;  %v1044_v28 = vpop.trf.xlu0 }
 0x17f   : > { %1490 = vst.msk [vmem:[%s2861_s27 + $0x200] sm:$0xff] %vm1425_vm0, %v1361_v3  ;;  %v1228_v40 = vmul.f32 %v2837_v25, %v1044_v28 }
 0x180   : > { %v1380_v27 = vadd.f32 %v2853_v47, %v1246_v55 }
 0x181   : > { %v1079_v57 = vpop.trf.xlu1  ;;  %v1362_v15 = vadd.f32 %v2853_v47, %v1228_v40 }
 0x182   : > { %1509 = vst.msk [vmem:[%s2861_s27 + $0x298] sm:$0xff] %vm1425_vm0, %v1380_v27  ;;  %v1247_v58 = vmul.f32 %v2837_v25, %v1079_v57  ;;  %v1045_v54 = vpop.trf.xlu0 }
 0x183   : > { %1491 = vst.msk [vmem:[%s2861_s27 + $0x208] sm:$0xff] %vm1425_vm0, %v1362_v15  ;;  %v1229_v39 = vmul.f32 %v2837_v25, %v1045_v54 }
 0x184   : > { %v1381_v35 = vadd.f32 %v2853_v47, %v1247_v58 }
 0x185   : > { %v1080_v14 = vpop.trf.xlu1  ;;  %v1363_v59 = vadd.f32 %v2853_v47, %v1229_v39 }
 0x186   : > { %1510 = vst.msk [vmem:[%s2861_s27 + $0x2a0] sm:$0xff] %vm1425_vm0, %v1381_v35  ;;  %v1248_v22 = vmul.f32 %v2837_v25, %v1080_v14  ;;  %v1046_v33 = vpop.trf.xlu0 }
 0x187   : > { %1492 = vst.msk [vmem:[%s2861_s27 + $0x210] sm:$0xff] %vm1425_vm0, %v1363_v59  ;;  %v1230_v42 = vmul.f32 %v2837_v25, %v1046_v33 }
 0x188   : > { %v1382_v36 = vadd.f32 %v2853_v47, %v1248_v22 }
 0x189   : > { %v1081_v13 = vpop.trf.xlu1  ;;  %v1364_v6 = vadd.f32 %v2853_v47, %v1230_v42 }
 0x18a   : > { %1511 = vst.msk [vmem:[%s2861_s27 + $0x2a8] sm:$0xff] %vm1425_vm0, %v1382_v36  ;;  %v1249_v2 = vmul.f32 %v2837_v25, %v1081_v13  ;;  %v1047_v44 = vpop.trf.xlu0 }
 0x18b   : > { %1493 = vst.msk [vmem:[%s2861_s27 + $0x218] sm:$0xff] %vm1425_vm0, %v1364_v6  ;;  %v1231_v49 = vmul.f32 %v2837_v25, %v1047_v44  ;;  %v3349_v44 = vld [vmem:[%s3500_s1] ss:$0 sm:$0xff] }
 0x18c   : > { %v1383_v51 = vadd.f32 %v2853_v47, %v1249_v2 }
 0x18d   : > { %v1082_v19 = vpop.trf.xlu1  ;;  %v1365_v4 = vadd.f32 %v2853_v47, %v1231_v49 }
 0x18e   : > { %1512 = vst.msk [vmem:[%s2861_s27 + $0x2b0] sm:$0xff] %vm1425_vm0, %v1383_v51  ;;  %v1250_v34 = vmul.f32 %v2837_v25, %v1082_v19  ;;  %v1048_v26 = vpop.trf.xlu0 }
 0x18f   : > { %1494 = vst.msk [vmem:[%s2861_s27 + $0x220] sm:$0xff] %vm1425_vm0, %v1365_v4  ;;  %v1232_v41 = vmul.f32 %v2837_v25, %v1048_v26 }
 0x190   : > { %v1384_v10 = vadd.f32 %v2853_v47, %v1250_v34 }
 0x191   : > { %v1083_v43 = vpop.trf.xlu1  ;;  %v1366_v48 = vadd.f32 %v2853_v47, %v1232_v41 }
 0x192   : > { %1513 = vst.msk [vmem:[%s2861_s27 + $0x2b8] sm:$0xff] %vm1425_vm0, %v1384_v10  ;;  %v1251_v7 = vmul.f32 %v2837_v25, %v1083_v43  ;;  %v1049_v52 = vpop.trf.xlu0  ;;  %v3366_v43 = vld [vmem:[%s3501_s2] ss:$0 sm:$0xff] }
 0x193   : > { %1495 = vst.msk [vmem:[%s2861_s27 + $0x228] sm:$0xff] %vm1425_vm0, %v1366_v48  ;;  %v1233_v56 = vmul.f32 %v2837_v25, %v1049_v52 }
 0x194   : > { %v1385_v61 = vadd.f32 %v2853_v47, %v1251_v7 }
 0x195   : > { %v1084_v24 = vpop.trf.xlu1  ;;  %v1367_v5 = vadd.f32 %v2853_v47, %v1233_v56 }
 0x196   : > { %1514 = vst.msk [vmem:[%s2861_s27 + $0x2c0] sm:$0xff] %vm1425_vm0, %v1385_v61  ;;  %v1252_v45 = vmul.f32 %v2837_v25, %v1084_v24  ;;  %v1050_v0 = vpop.trf.xlu0 }
 0x197   : > { %1496 = vst.msk [vmem:[%s2861_s27 + $0x230] sm:$0xff] %vm1425_vm0, %v1367_v5  ;;  %v1234_v53 = vmul.f32 %v2837_v25, %v1050_v0 }
 0x198   : > { %v1386_v8 = vadd.f32 %v2853_v47, %v1252_v45 }
 0x199   : > { %v1085_v20 = vpop.trf.xlu1  ;;  %v1368_v37 = vadd.f32 %v2853_v47, %v1234_v53 }
 0x19a   : > { %1515 = vst.msk [vmem:[%s2861_s27 + $0x2c8] sm:$0xff] %vm1425_vm0, %v1386_v8  ;;  %v1253_v32 = vmul.f32 %v2837_v25, %v1085_v20  ;;  %v1051_v30 = vpop.trf.xlu0 }
 0x19b   : > { %1497 = vst.msk [vmem:[%s2861_s27 + $0x238] sm:$0xff] %vm1425_vm0, %v1368_v37  ;;  %v1235_v11 = vmul.f32 %v2837_v25, %v1051_v30 }
 0x19c   : > { %v1387_v21 = vadd.f32 %v2853_v47, %v1253_v32 }
 0x19d   : > { %v1086_v62 = vpop.trf.xlu1  ;;  %v1369_v18 = vadd.f32 %v2853_v47, %v1235_v11 }
 0x19e   : > { %1516 = vst.msk [vmem:[%s2861_s27 + $0x2d0] sm:$0xff] %vm1425_vm0, %v1387_v21  ;;  %v1254_v63 = vmul.f32 %v2837_v25, %v1086_v62  ;;  %v1052_v31 = vpop.trf.xlu0 }
 0x19f   : > { %1498 = vst.msk [vmem:[%s2861_s27 + $0x240] sm:$0xff] %vm1425_vm0, %v1369_v18  ;;  %v1236_v50 = vmul.f32 %v2837_v25, %v1052_v31 }
 0x1a0   : > { %v1388_v12 = vadd.f32 %v2853_v47, %v1254_v63 }
 0x1a1   : > { %v1087_v1 = vpop.trf.xlu1  ;;  %v1370_v60 = vadd.f32 %v2853_v47, %v1236_v50 }
 0x1a2   : > { %1517 = vst.msk [vmem:[%s2861_s27 + $0x2d8] sm:$0xff] %vm1425_vm0, %v1388_v12  ;;  %v1255_v38 = vmul.f32 %v2837_v25, %v1087_v1  ;;  %v1053_v9 = vpop.trf.xlu0 }
 0x1a3   : > { %1499 = vst.msk [vmem:[%s2861_s27 + $0x248] sm:$0xff] %vm1425_vm0, %v1370_v60  ;;  %v1237_v29 = vmul.f32 %v2837_v25, %v1053_v9 }
 0x1a4   : > { %v1389_v23 = vadd.f32 %v2853_v47, %v1255_v38 }
 0x1a5   : > { %v1088_v16 = vpop.trf.xlu1  ;;  %v1371_v17 = vadd.f32 %v2853_v47, %v1237_v29 }
 0x1a6   : > { %1518 = vst.msk [vmem:[%s2861_s27 + $0x2e0] sm:$0xff] %vm1425_vm0, %v1389_v23  ;;  %v1256_v46 = vmul.f32 %v2837_v25, %v1088_v16  ;;  %v1054_v55 = vpop.trf.xlu0 }
 0x1a7   : > { %1500 = vst.msk [vmem:[%s2861_s27 + $0x250] sm:$0xff] %vm1425_vm0, %v1371_v17  ;;  %v1238_v28 = vmul.f32 %v2837_v25, %v1054_v55 }
 0x1a8   : > { %v1390_v3 = vadd.f32 %v2853_v47, %v1256_v46 }
 0x1a9   : > { %v1089_v27 = vpop.trf.xlu1  ;;  %v1372_v57 = vadd.f32 %v2853_v47, %v1238_v28 }
 0x1aa   : > { %1519 = vst.msk [vmem:[%s2861_s27 + $0x2e8] sm:$0xff] %vm1425_vm0, %v1390_v3  ;;  %v1257_v40 = vmul.f32 %v2837_v25, %v1089_v27  ;;  %v1055_v58 = vpop.trf.xlu0 }
 0x1ab   : > { %1501 = vst.msk [vmem:[%s2861_s27 + $0x258] sm:$0xff] %vm1425_vm0, %v1372_v57  ;;  %v1239_v54 = vmul.f32 %v2837_v25, %v1055_v58 }
 0x1ac   : > { %v1391_v15 = vadd.f32 %v2853_v47, %v1257_v40 }
 0x1ad   : > { %v1090_v35 = vpop.trf.xlu1  ;;  %v1373_v14 = vadd.f32 %v2853_v47, %v1239_v54 }
 0x1ae   : > { %1520 = vst.msk [vmem:[%s2861_s27 + $0x2f0] sm:$0xff] %vm1425_vm0, %v1391_v15  ;;  %v1258_v39 = vmul.f32 %v2837_v25, %v1090_v35  ;;  %v1056_v22 = vpop.trf.xlu0 }
 0x1af   : > { %1502 = vst.msk [vmem:[%s2861_s27 + $0x260] sm:$0xff] %vm1425_vm0, %v1373_v14  ;;  %v1240_v33 = vmul.f32 %v2837_v25, %v1056_v22 }
 0x1b0   : > { %v1392_v59 = vadd.f32 %v2853_v47, %v1258_v39 }
 0x1b1   : > { %v1139_v36 = vpop.trf.xlu1  ;;  %v1374_v13 = vadd.f32 %v2853_v47, %v1240_v33 }
 0x1b2   : > { %1521 = vst.msk [vmem:[%s2861_s27 + $0x2f8] sm:$0xff] %vm1425_vm0, %v1392_v59  ;;  %v1275_v42 = vmul.f32 %v2837_v25, %v1139_v36  ;;  %v1057_v2 = vpop.trf.xlu0 }
 0x1b3   : > { %1503 = vst.msk [vmem:[%s2861_s27 + $0x268] sm:$0xff] %vm1425_vm0, %v1374_v13  ;;  %v1241_v51 = vmul.f32 %v3349_v44, %v1057_v2 }
 0x1b4   : > { %v1409_v6 = vadd.f32 %v2853_v47, %v1275_v42 }
 0x1b5   : > { %v1140_v49 = vpop.trf.xlu1  ;;  %v1375_v19 = vadd.f32 %v2853_v47, %v1241_v51 }
 0x1b6   : > { %1538 = vst.msk [vmem:[%s2861_s27 + $0x380] sm:$0xff] %vm1425_vm0, %v1409_v6  ;;  %v1276_v25 = vmul.f32 %v3349_v44, %v1140_v49  ;;  %v1058_v34 = vpop.trf.xlu0 }
 0x1b7   : > { %1504 = vst.msk [vmem:[%s2861_s27 + $0x270] sm:$0xff] %vm1425_vm0, %v1375_v19  ;;  %v1242_v26 = vmul.f32 %v3349_v44, %v1058_v34 }
 0x1b8   : > { %v1410_v4 = vadd.f32 %v2853_v47, %v1276_v25 }
 0x1b9   : > { %v1141_v10 = vpop.trf.xlu1  ;;  %v1376_v7 = vadd.f32 %v3366_v43, %v1242_v26 }
 0x1ba   : > { %1539 = vst.msk [vmem:[%s2861_s27 + $0x388] sm:$0xff] %vm1425_vm0, %v1410_v4  ;;  %v1277_v41 = vmul.f32 %v3349_v44, %v1141_v10  ;;  %v1107_v48 = vpop.trf.xlu0 }
 0x1bb   : > { %1505 = vst.msk [vmem:[%s2861_s27 + $0x278] sm:$0xff] %vm1425_vm0, %v1376_v7  ;;  %v1259_v52 = vmul.f32 %v3349_v44, %v1107_v48 }
 0x1bc   : > { %v1411_v47 = vadd.f32 %v3366_v43, %v1277_v41 }
 0x1bd   : > { %v1142_v61 = vpop.trf.xlu1  ;;  %v1393_v24 = vadd.f32 %v3366_v43, %v1259_v52 }
 0x1be   : > { %1540 = vst.msk [vmem:[%s2861_s27 + $0x390] sm:$0xff] %vm1425_vm0, %v1411_v47  ;;  %v1278_v56 = vmul.f32 %v3349_v44, %v1142_v61  ;;  %v1108_v45 = vpop.trf.xlu0 }
 0x1bf   : > { %1522 = vst.msk [vmem:[%s2861_s27 + $0x300] sm:$0xff] %vm1425_vm0, %v1393_v24  ;;  %v1260_v0 = vmul.f32 %v3349_v44, %v1108_v45 }
 0x1c0   : > { %v1412_v5 = vadd.f32 %v3366_v43, %v1278_v56 }
 0x1c1   : > { %v1143_v8 = vpop.trf.xlu1  ;;  %v1394_v20 = vadd.f32 %v3366_v43, %v1260_v0 }
 0x1c2   : > { %1541 = vst.msk [vmem:[%s2861_s27 + $0x398] sm:$0xff] %vm1425_vm0, %v1412_v5  ;;  %v1279_v53 = vmul.f32 %v3349_v44, %v1143_v8  ;;  %v1109_v32 = vpop.trf.xlu0 }
 0x1c3   : > { %1523 = vst.msk [vmem:[%s2861_s27 + $0x308] sm:$0xff] %vm1425_vm0, %v1394_v20  ;;  %v1261_v30 = vmul.f32 %v3349_v44, %v1109_v32 }
 0x1c4   : > { %v1413_v37 = vadd.f32 %v3366_v43, %v1279_v53 }
 0x1c5   : > { %v1144_v21 = vpop.trf.xlu1  ;;  %v1395_v62 = vadd.f32 %v3366_v43, %v1261_v30 }
 0x1c6   : > { %1542 = vst.msk [vmem:[%s2861_s27 + $0x3a0] sm:$0xff] %vm1425_vm0, %v1413_v37  ;;  %v1280_v11 = vmul.f32 %v3349_v44, %v1144_v21  ;;  %v1110_v63 = vpop.trf.xlu0 }
 0x1c7   : > { %1524 = vst.msk [vmem:[%s2861_s27 + $0x310] sm:$0xff] %vm1425_vm0, %v1395_v62  ;;  %v1262_v31 = vmul.f32 %v3349_v44, %v1110_v63 }
 0x1c8   : > { %v1414_v18 = vadd.f32 %v3366_v43, %v1280_v11 }
 0x1c9   : > { %v1145_v12 = vpop.trf.xlu1  ;;  %v1396_v1 = vadd.f32 %v3366_v43, %v1262_v31 }
 0x1ca   : > { %1543 = vst.msk [vmem:[%s2861_s27 + $0x3a8] sm:$0xff] %vm1425_vm0, %v1414_v18  ;;  %v1281_v50 = vmul.f32 %v3349_v44, %v1145_v12  ;;  %v1111_v38 = vpop.trf.xlu0 }
 0x1cb   : > { %1525 = vst.msk [vmem:[%s2861_s27 + $0x318] sm:$0xff] %vm1425_vm0, %v1396_v1  ;;  %v1263_v9 = vmul.f32 %v3349_v44, %v1111_v38 }
 0x1cc   : > { %v1415_v60 = vadd.f32 %v3366_v43, %v1281_v50 }
 0x1cd   : > { %v1146_v23 = vpop.trf.xlu1  ;;  %v1397_v16 = vadd.f32 %v3366_v43, %v1263_v9 }
 0x1ce   : > { %1544 = vst.msk [vmem:[%s2861_s27 + $0x3b0] sm:$0xff] %vm1425_vm0, %v1415_v60  ;;  %v1282_v29 = vmul.f32 %v3349_v44, %v1146_v23  ;;  %v1112_v46 = vpop.trf.xlu0 }
 0x1cf   : > { %1526 = vst.msk [vmem:[%s2861_s27 + $0x320] sm:$0xff] %vm1425_vm0, %v1397_v16  ;;  %v1264_v55 = vmul.f32 %v3349_v44, %v1112_v46 }
 0x1d0   : > { %v1416_v17 = vadd.f32 %v3366_v43, %v1282_v29 }
 0x1d1   : > { %v1147_v3 = vpop.trf.xlu1  ;;  %v1398_v27 = vadd.f32 %v3366_v43, %v1264_v55 }
 0x1d2   : > { %1545 = vst.msk [vmem:[%s2861_s27 + $0x3b8] sm:$0xff] %vm1425_vm0, %v1416_v17  ;;  %v1283_v28 = vmul.f32 %v3349_v44, %v1147_v3  ;;  %v1113_v40 = vpop.trf.xlu0 }
 0x1d3   : > { %1527 = vst.msk [vmem:[%s2861_s27 + $0x328] sm:$0xff] %vm1425_vm0, %v1398_v27  ;;  %v1265_v58 = vmul.f32 %v3349_v44, %v1113_v40 }
 0x1d4   : > { %v1417_v57 = vadd.f32 %v3366_v43, %v1283_v28 }
 0x1d5   : > { %v1148_v15 = vpop.trf.xlu1  ;;  %v1399_v35 = vadd.f32 %v3366_v43, %v1265_v58 }
 0x1d6   : > { %1546 = vst.msk [vmem:[%s2861_s27 + $0x3c0] sm:$0xff] %vm1425_vm0, %v1417_v57  ;;  %v1284_v54 = vmul.f32 %v3349_v44, %v1148_v15  ;;  %v1114_v39 = vpop.trf.xlu0 }
 0x1d7   : > { %1528 = vst.msk [vmem:[%s2861_s27 + $0x330] sm:$0xff] %vm1425_vm0, %v1399_v35  ;;  %v1266_v22 = vmul.f32 %v3349_v44, %v1114_v39 }
 0x1d8   : > { %v1418_v14 = vadd.f32 %v3366_v43, %v1284_v54 }
 0x1d9   : > { %v1149_v59 = vpop.trf.xlu1  ;;  %v1400_v36 = vadd.f32 %v3366_v43, %v1266_v22 }
 0x1da   : > { %1547 = vst.msk [vmem:[%s2861_s27 + $0x3c8] sm:$0xff] %vm1425_vm0, %v1418_v14  ;;  %v1285_v33 = vmul.f32 %v3349_v44, %v1149_v59  ;;  %v1115_v42 = vpop.trf.xlu0 }
 0x1db   : > { %1529 = vst.msk [vmem:[%s2861_s27 + $0x338] sm:$0xff] %vm1425_vm0, %v1400_v36  ;;  %v1267_v2 = vmul.f32 %v3349_v44, %v1115_v42 }
 0x1dc   : > { %v1419_v13 = vadd.f32 %v3366_v43, %v1285_v33 }
 0x1dd   : > { %v1150_v6 = vpop.trf.xlu1  ;;  %v1401_v49 = vadd.f32 %v3366_v43, %v1267_v2 }
 0x1de   : > { %1548 = vst.msk [vmem:[%s2861_s27 + $0x3d0] sm:$0xff] %vm1425_vm0, %v1419_v13  ;;  %v1286_v51 = vmul.f32 %v3349_v44, %v1150_v6  ;;  %v1116_v25 = vpop.trf.xlu0 }
 0x1df   : > { %1530 = vst.msk [vmem:[%s2861_s27 + $0x340] sm:$0xff] %vm1425_vm0, %v1401_v49  ;;  %v1268_v34 = vmul.f32 %v3349_v44, %v1116_v25 }
 0x1e0   : > { %v1420_v19 = vadd.f32 %v3366_v43, %v1286_v51 }
 0x1e1   : > { %v1151_v4 = vpop.trf.xlu1  ;;  %v1402_v10 = vadd.f32 %v3366_v43, %v1268_v34 }
 0x1e2   : > { %1549 = vst.msk [vmem:[%s2861_s27 + $0x3d8] sm:$0xff] %vm1425_vm0, %v1420_v19  ;;  %v1287_v26 = vmul.f32 %v3349_v44, %v1151_v4  ;;  %v1117_v41 = vpop.trf.xlu0 }
 0x1e3   : > { %1531 = vst.msk [vmem:[%s2861_s27 + $0x348] sm:$0xff] %vm1425_vm0, %v1402_v10  ;;  %v1269_v48 = vmul.f32 %v3349_v44, %v1117_v41 }
 0x1e4   : > { %v1421_v7 = vadd.f32 %v3366_v43, %v1287_v26 }
 0x1e5   : > { %v1152_v47 = vpop.trf.xlu1  ;;  %v1403_v61 = vadd.f32 %v3366_v43, %v1269_v48 }
 0x1e6   : > { %1550 = vst.msk [vmem:[%s2861_s27 + $0x3e0] sm:$0xff] %vm1425_vm0, %v1421_v7  ;;  %v1288_v52 = vmul.f32 %v3349_v44, %v1152_v47  ;;  %v1118_v56 = vpop.trf.xlu0 }
 0x1e7   : > { %1532 = vst.msk [vmem:[%s2861_s27 + $0x350] sm:$0xff] %vm1425_vm0, %v1403_v61  ;;  %v1270_v45 = vmul.f32 %v3349_v44, %v1118_v56 }
 0x1e8   : > { %v1422_v24 = vadd.f32 %v3366_v43, %v1288_v52 }
 0x1e9   : > { %v1153_v5 = vpop.trf.xlu1  ;;  %v1404_v8 = vadd.f32 %v3366_v43, %v1270_v45 }
 0x1ea   : > { %1551 = vst.msk [vmem:[%s2861_s27 + $0x3e8] sm:$0xff] %vm1425_vm0, %v1422_v24  ;;  %v1289_v0 = vmul.f32 %v3349_v44, %v1153_v5  ;;  %v1119_v53 = vpop.trf.xlu0 }
 0x1eb   : > { %1533 = vst.msk [vmem:[%s2861_s27 + $0x358] sm:$0xff] %vm1425_vm0, %v1404_v8  ;;  %v1271_v32 = vmul.f32 %v3349_v44, %v1119_v53 }
 0x1ec   : > { %v1423_v20 = vadd.f32 %v3366_v43, %v1289_v0 }
 0x1ed   : > { %v1154_v37 = vpop.trf.xlu1  ;;  %v1405_v21 = vadd.f32 %v3366_v43, %v1271_v32 }
 0x1ee   : > { %1552 = vst.msk [vmem:[%s2861_s27 + $0x3f0] sm:$0xff] %vm1425_vm0, %v1423_v20  ;;  %v1290_v30 = vmul.f32 %v3349_v44, %v1154_v37  ;;  %v1120_v11 = vpop.trf.xlu0 }
 0x1ef   : > { %1534 = vst.msk [vmem:[%s2861_s27 + $0x360] sm:$0xff] %vm1425_vm0, %v1405_v21  ;;  %v1272_v63 = vmul.f32 %v3349_v44, %v1120_v11 }
 0x1f0   : > { %v1424_v62 = vadd.f32 %v3366_v43, %v1290_v30 }
 0x1f1   : > { %v1406_v18 = vadd.f32 %v3366_v43, %v1272_v63 }
 0x1f2   : > { %1553 = vst.msk [vmem:[%s2861_s27 + $0x3f8] sm:$0xff] %vm1425_vm0, %v1424_v62  ;;  %v1121_v31 = vpop.trf.xlu0 }
 0x1f3   : > { %1535 = vst.msk [vmem:[%s2861_s27 + $0x368] sm:$0xff] %vm1425_vm0, %v1406_v18  ;;  %v1273_v12 = vmul.f32 %v3349_v44, %v1121_v31 }
 0x1f5   : > { %v1407_v50 = vadd.f32 %v3366_v43, %v1273_v12 }
 0x1f6   : > { %v1122_v1 = vpop.trf.xlu0 }
 0x1f7   : > { %1536 = vst.msk [vmem:[%s2861_s27 + $0x370] sm:$0xff] %vm1425_vm0, %v1407_v50  ;;  %v1274_v38 = vmul.f32 %v3349_v44, %v1122_v1 }
 0x1f9   : > { %v1408_v60 = vadd.f32 %v3366_v43, %v1274_v38 }
 0x1fb   : > { %1537 = vst.msk [vmem:[%s2861_s27 + $0x378] sm:$0xff] %vm1425_vm0, %v1408_v60 }
 0x1fc PF: > { %s13_s14 = sadd.s32 1, %s1720_s14   ;;  %s3656_s12 = smov %s1716_s13 }
 0x1fd   : > { %p10_p5 = scmp.ge.s32.totalorder %s13_s14, 4   ;;  %s3657_s13 = smov %s3659_s15 }
 0x1ff   :  { %12 = sbr.rel (!%p10_p5) target bundleno = 2 (0x2), region = 62 }

</bundles_post_ra>
